<compile_context>
chip_gen: v7x
topology: tpu7x:2x2x1
jax: 0.10.0
libtpu: 0.0.40
codegen_flags: <defaults>
</compile_context>

<pallas_src>
import jax
import jax.numpy as jnp
from jax.experimental import pallas as pl
from jax.experimental.pallas import tpu as pltpu


# --------------------------------------------------------------------------- #
# Kernels
# --------------------------------------------------------------------------- #
def gcn_stage1_kernel(adjT_ref, x_ref, dout_full_ref, din_ref, dout_tile_ref,
                      w1_ref, b1_ref, w2_ref, t_ref):
    """Per row tile of nodes: GraphConv1 (both heads) + ReLU + GraphConv2 weight.

    A_hat = D_in^{-1/2} A^T D_out^{-1/2}  =>  A_hat @ X = din * (A^T @ (dout * X)),
    i.e. the degree normalization is two cheap per-row VPU scalings, never an N^2 op.
    """
    # ---- GraphConv 1 aggregation (shared by both heads) ----
    xs = (x_ref[...] * dout_full_ref[...]).astype(jnp.bfloat16)            # (N, D)
    agg = jnp.dot(adjT_ref[...], xs, preferred_element_type=jnp.float32)   # (TM, D)
    agg = agg * din_ref[...]                                               # dst norm

    # ---- GraphConv 1 linear + bias + ReLU, both heads: W1cat = [W1_a | W1_b] ----
    h = jnp.dot(agg.astype(jnp.bfloat16), w1_ref[...],
                preferred_element_type=jnp.float32) + b1_ref[...]          # (TM, 2D)
    h = jnp.maximum(h, 0.0)
    # TODO(synk): nn.Dropout(p=0.5) is identity in eval mode; training-mode
    # stochastic masking (pltpu.prng_random_bits) intentionally not implemented.

    # ---- GraphConv 2: weight BEFORE aggregation (in_feats > out_feats), with the
    # layer-2 source-side dout^{-1/2} scaling folded in.  W2bd = blockdiag(W2_a, W2_b)
    t = jnp.dot(h.astype(jnp.bfloat16), w2_ref[...],
                preferred_element_type=jnp.float32)                        # (TM, D)
    t_ref[...] = (t * dout_tile_ref[...]).astype(t_ref.dtype)              # bf16 out


def gcn_stage2_kernel(adjT_ref, t_ref, din_ref, b2_ref, feat_ref,
                      gamma_ref, beta_ref, wf1_ref, bf1_ref, wf2_ref, bf2_ref,
                      o_ref):
    """Per row tile: GraphConv2 aggregation + bias, LayerNorm, residual, FFN, residual."""
    # ---- GraphConv 2 aggregation: y = din * (A^T[tile] @ t_scaled) + b2 ----
    agg = jnp.dot(adjT_ref[...], t_ref[...], preferred_element_type=jnp.float32)
    y = agg * din_ref[...] + b2_ref[...]                                   # (TM, D)

    # ---- LayerNorm(hidden)  (eps matches torch.nn.LayerNorm default) ----
    mean = jnp.mean(y, axis=-1, keepdims=True)
    var = jnp.mean(jnp.square(y - mean), axis=-1, keepdims=True)
    ln = (y - mean) * jax.lax.rsqrt(var + 1e-5) * gamma_ref[...] + beta_ref[...]

    # ---- residual 1 ----
    z = feat_ref[...] + ln

    # ---- feed-forward: Linear -> ReLU -> Dropout(eval = id) -> Linear ----
    f1 = jnp.dot(z.astype(jnp.bfloat16), wf1_ref[...],
                 preferred_element_type=jnp.float32) + bf1_ref[...]
    f1 = jnp.maximum(f1, 0.0)
    # TODO(synk): eval-mode nn.Dropout -> identity (training-mode not implemented).
    f2 = jnp.dot(f1.astype(jnp.bfloat16), wf2_ref[...],
                 preferred_element_type=jnp.float32) + bf2_ref[...]

    # ---- residual 2 ----
    o_ref[...] = (z + f2).astype(o_ref.dtype)


# --------------------------------------------------------------------------- #
# Wrapper
# --------------------------------------------------------------------------- #
def _vmem_limit(*block_nbytes):
    # double-buffering of every operand + headroom, capped below v7x's 64 MiB VMEM
    return int(min(2 * sum(block_nbytes) + (8 << 20), 60 << 20))


def graph_module_forward(adj, features, params, *, tile_m=None):
    """Eval-mode forward of GraphModule.

    adj:      (N, N) dense adjacency, adj[src, dst] = 1.0 for an edge src -> dst.
    features: (..., hidden) node features (reshaped to (N, hidden) internally).
    params:   dict with w1 (H, D, D), b1 (H, D), w2 (H, D, D//H), b2 (H, D//H),
              gamma, beta (D,), wf1 (D, D), bf1 (D,), wf2 (D, D), bf2 (D,).
    """
    f32, bf16 = jnp.float32, jnp.bfloat16
    d = params["wf1"].shape[0]                      # hidden_dim
    nh, _, dh = params["w2"].shape                  # n_head, _, hidden_dim // n_head
    assert nh * dh == d

    orig_shape = features.shape
    x = features.reshape(-1, d).astype(f32)         # h = features.reshape(-1, hidden)
    n = x.shape[0]
    assert adj.shape == (n, n)

    if tile_m is None:
        tile_m = 256 if n % 256 == 0 else (128 if n % 128 == 0 else n)
    assert n % tile_m == 0, "node count must be divisible by the row tile"
    nt = n // tile_m

    # ---- graph preprocessing: the only O(N^2) wrapper work is one bf16 transpose
    # (message-passing orientation); normalization itself is fused in the kernels.
    adj = adj.astype(f32)
    adjT = adj.T.astype(bf16)                                        # exact: 0/1 values
    dout = (jnp.maximum(adj.sum(axis=1), 1.0) ** -0.5)[:, None].astype(f32)  # src norm
    din = (jnp.maximum(adj.sum(axis=0), 1.0) ** -0.5)[:, None].astype(f32)   # dst norm
    # (N,1) f32 vectors are lane-padded in VMEM; negligible at these sizes.

    # ---- parameter packing: both heads fused into single MXU-friendly matmuls ----
    w1cat = jnp.concatenate([params["w1"][h] for h in range(nh)], axis=1).astype(bf16)  # (D, H*D)
    b1cat = jnp.concatenate([params["b1"][h] for h in range(nh)], axis=0
                            ).reshape(1, nh * d).astype(f32)
    w2bd = jnp.zeros((nh * d, d), f32)
    for h in range(nh):                                              # block-diagonal W2
        w2bd = w2bd.at[h * d:(h + 1) * d, h * dh:(h + 1) * dh].set(params["w2"][h])
    w2bd = w2bd.astype(bf16)
    b2cat = jnp.concatenate([params["b2"][h] for h in range(nh)], axis=0
                            ).reshape(1, d).astype(f32)
    gamma = params["gamma"].reshape(1, d).astype(f32)
    beta = params["beta"].reshape(1, d).astype(f32)
    wf1 = params["wf1"].astype(bf16)
    bf1 = params["bf1"].reshape(1, d).astype(f32)
    wf2 = params["wf2"].astype(bf16)
    bf2 = params["bf2"].reshape(1, d).astype(f32)

    blk1 = (tile_m * n * 2 + n * d * 4 + n * 4 + 2 * tile_m * 4
            + d * (nh * d) * 2 + (nh * d) * 4 + (nh * d) * d * 2 + tile_m * d * 2)
    blk2 = (tile_m * n * 2 + n * d * 2 + tile_m * 4 + 5 * d * 4
            + 2 * tile_m * d * 4 + 2 * d * d * 2)

    # ---------------- stage 1: both heads' GraphConv1 + ReLU + W2 (pre-aggregation) ----
    t_scaled = pl.pallas_call(
        gcn_stage1_kernel,
        out_shape=jax.ShapeDtypeStruct((n, d), bf16),
        grid=(nt,),
        in_specs=[
            pl.BlockSpec((tile_m, n), lambda i: (i, 0)),     # A^T row tile (streamed)
            pl.BlockSpec((n, d), lambda i: (0, 0)),          # X (resident)
            pl.BlockSpec((n, 1), lambda i: (0, 0)),          # dout^{-1/2} (full)
            pl.BlockSpec((tile_m, 1), lambda i: (i, 0)),     # din^{-1/2}  (tile)
            pl.BlockSpec((tile_m, 1), lambda i: (i, 0)),     # dout^{-1/2} (tile)
            pl.BlockSpec((d, nh * d), lambda i: (0, 0)),     # W1cat
            pl.BlockSpec((1, nh * d), lambda i: (0, 0)),     # b1cat
            pl.BlockSpec((nh * d, d), lambda i: (0, 0)),     # W2 block-diag
        ],
        out_specs=pl.BlockSpec((tile_m, d), lambda i: (i, 0)),
        compiler_params=pltpu.CompilerParams(
            dimension_semantics=("parallel",),               # row tiles -> v7x 2 TCs
            vmem_limit_bytes=_vmem_limit(blk1)),
    )(adjT, x, dout, din, dout, w1cat, b1cat, w2bd)

    # ---------------- stage 2: GraphConv2 aggregation + LN + residual + FFN + residual ----
    out = pl.pallas_call(
        gcn_stage2_kernel,
        out_shape=jax.ShapeDtypeStruct((n, d), features.dtype),
        grid=(nt,),
        in_specs=[
            pl.BlockSpec((tile_m, n), lambda i: (i, 0)),     # A^T row tile (streamed)
            pl.BlockSpec((n, d), lambda i: (0, 0)),          # t_scaled (resident, bf16)
            pl.BlockSpec((tile_m, 1), lambda i: (i, 0)),     # din^{-1/2} (tile)
            pl.BlockSpec((1, d), lambda i: (0, 0)),          # b2cat
            pl.BlockSpec((tile_m, d), lambda i: (i, 0)),     # features (residual)
            pl.BlockSpec((1, d), lambda i: (0, 0)),          # LN gamma
            pl.BlockSpec((1, d), lambda i: (0, 0)),          # LN beta
            pl.BlockSpec((d, d), lambda i: (0, 0)),          # Wf1
            pl.BlockSpec((1, d), lambda i: (0, 0)),          # bf1
            pl.BlockSpec((d, d), lambda i: (0, 0)),          # Wf2
            pl.BlockSpec((1, d), lambda i: (0, 0)),          # bf2
        ],
        out_specs=pl.BlockSpec((tile_m, d), lambda i: (i, 0)),
        compiler_params=pltpu.CompilerParams(
            dimension_semantics=("parallel",),
            vmem_limit_bytes=_vmem_limit(blk2)),
    )(adjT, t_scaled, din, b2cat, x, gamma, beta, wf1, bf1, wf2, bf2)

    return out.reshape(orig_shape)


# --------------------------------------------------------------------------- #
# Plain-JAX reference (eval mode).  emulate_bf16=True mirrors the kernel's bf16
# MXU casting points for a tight correctness check; emulate_bf16=False is the
# pure-f32 mathematical reference (deviates from the bf16 path by ~1e-2..1e-1).
# --------------------------------------------------------------------------- #
def graph_module_ref(adj, features, params, *, emulate_bf16=True):
    f32 = jnp.float32
    cast = (lambda a: a.astype(jnp.bfloat16)) if emulate_bf16 else (lambda a: a)
    dot = lambda a, b: jnp.dot(cast(a), cast(b), preferred_element_type=f32)

    d = params["wf1"].shape[0]
    x = features.reshape(-1, d).astype(f32)
    adj = adj.astype(f32)
    adjT = adj.T
    dout = (jnp.maximum(adj.sum(axis=1), 1.0) ** -0.5)[:, None]
    din = (jnp.maximum(adj.sum(axis=0), 1.0) ** -0.5)[:, None]

    heads = []
    for h in range(params["w1"].shape[0]):
        agg = dot(adjT, x * dout) * din                                   # A_hat @ X
        hid = jnp.maximum(dot(agg, params["w1"][h]) + params["b1"][h], 0.0)
        t = cast(dot(hid, params["w2"][h]) * dout).astype(f32)            # weight first
        heads.append(dot(adjT, t) * din + params["b2"][h])                # aggregate
    y = jnp.concatenate(heads, axis=-1)

    mean = jnp.mean(y, axis=-1, keepdims=True)
    var = jnp.mean(jnp.square(y - mean), axis=-1, keepdims=True)
    ln = (y - mean) * jax.lax.rsqrt(var + 1e-5) * params["gamma"] + params["beta"]
    z = x + ln
    f1 = jnp.maximum(dot(z, params["wf1"]) + params["bf1"], 0.0)
    f2 = dot(f1, params["wf2"]) + params["bf2"]
    return (z + f2).reshape(features.shape)


# --------------------------------------------------------------------------- #
if __name__ == "__main__":
    key = jax.random.PRNGKey(0)
    keys = jax.random.split(key, 14)

    N = 512            # graph nodes (row-tiled: TM=256 -> grid of 2 parallel tiles)
    D = 128            # hidden_dim (lane-dense output stores)
    NH = 2             # n_head
    DH = D // NH

    # Deterministic random directed graph (dense adjacency) and node features.
    adj = (jax.random.uniform(keys[0], (N, N)) < 0.05).astype(jnp.float32)
    features = jax.random.normal(keys[1], (N, D), dtype=jnp.float32)

    def xavier(k, shape):
        limit = (6.0 / (shape[0] + shape[1])) ** 0.5
        return jax.random.uniform(k, shape, jnp.float32, -limit, limit)

    params = dict(
        w1=jnp.stack([xavier(keys[2], (D, D)), xavier(keys[3], (D, D))]),
        b1=0.1 * jax.random.normal(keys[4], (NH, D), jnp.float32),
        w2=jnp.stack([xavier(keys[5], (D, DH)), xavier(keys[6], (D, DH))]),
        b2=0.1 * jax.random.normal(keys[7], (NH, DH), jnp.float32),
        gamma=1.0 + 0.1 * jax.random.normal(keys[8], (D,), jnp.float32),
        beta=0.1 * jax.random.normal(keys[9], (D,), jnp.float32),
        wf1=xavier(keys[10], (D, D)),
        bf1=0.1 * jax.random.normal(keys[11], (D,), jnp.float32),
        wf2=xavier(keys[12], (D, D)),
        bf2=0.1 * jax.random.normal(keys[13], (D,), jnp.float32),
    )

    out = jax.block_until_ready(graph_module_forward(adj, features, params))
    ref = graph_module_ref(adj, features, params, emulate_bf16=True)

    assert out.shape == features.shape
    assert jnp.allclose(out, ref, atol=1e-2, rtol=1e-2), "mismatch vs reference"
    print("KERNEL_OK")
</pallas_src>

<mosaic_0001>
module attributes {stable_mosaic.version = 11 : i64} {
  func.func @gcn_stage1_kernel(%arg0: i32, %arg1: memref<256x512xbf16, #tpu.memory_space<vmem>>, %arg2: memref<512x128xf32, #tpu.memory_space<vmem>>, %arg3: memref<512x1xf32, #tpu.memory_space<vmem>>, %arg4: memref<256x1xf32, #tpu.memory_space<vmem>>, %arg5: memref<256x1xf32, #tpu.memory_space<vmem>>, %arg6: memref<128x256xbf16, #tpu.memory_space<vmem>>, %arg7: memref<1x256xf32, #tpu.memory_space<vmem>>, %arg8: memref<256x128xbf16, #tpu.memory_space<vmem>>, %arg9: memref<256x128xbf16, #tpu.memory_space<vmem>>) attributes {dimension_semantics = [#tpu.dimension_semantics<parallel>], iteration_bounds = array<i64: 2>, scalar_prefetch = 0 : i64, scratch_operands = 0 : i64, tpu.core_type = #tpu.core_type<tc>, window_params = [{transform_indices = @transform_0, window_bounds = array<i64: 256, 512>}, {pipeline_mode = #tpu.pipeline_mode<synchronous>, transform_indices = @transform_1, window_bounds = array<i64: 512, 128>}, {pipeline_mode = #tpu.pipeline_mode<synchronous>, transform_indices = @transform_2, window_bounds = array<i64: 512, 1>}, {transform_indices = @transform_3, window_bounds = array<i64: 256, 1>}, {transform_indices = @transform_4, window_bounds = array<i64: 256, 1>}, {pipeline_mode = #tpu.pipeline_mode<synchronous>, transform_indices = @transform_5, window_bounds = array<i64: 128, 256>}, {pipeline_mode = #tpu.pipeline_mode<synchronous>, transform_indices = @transform_6, window_bounds = array<i64: 1, 256>}, {pipeline_mode = #tpu.pipeline_mode<synchronous>, transform_indices = @transform_7, window_bounds = array<i64: 256, 128>}, {transform_indices = @transform_8, window_bounds = array<i64: 256, 128>}]} {
    %c0 = arith.constant 0 : index
    %c0_0 = arith.constant 0 : index
    %0 = vector.load %arg2[%c0, %c0_0] : memref<512x128xf32, #tpu.memory_space<vmem>>, vector<512x128xf32>
    %c0_1 = arith.constant 0 : index
    %c0_2 = arith.constant 0 : index
    %1 = vector.load %arg3[%c0_1, %c0_2] : memref<512x1xf32, #tpu.memory_space<vmem>>, vector<512x1xf32>
    %2 = vector.broadcast %1 : vector<512x1xf32> to vector<512x128xf32>
    %3 = arith.mulf %0, %2 : vector<512x128xf32>
    %4 = arith.truncf %3 : vector<512x128xf32> to vector<512x128xbf16>
    %c0_3 = arith.constant 0 : index
    %c0_4 = arith.constant 0 : index
    %5 = vector.load %arg1[%c0_3, %c0_4] : memref<256x512xbf16, #tpu.memory_space<vmem>>, vector<256x512xbf16>
    %cst = arith.constant dense<0.000000e+00> : vector<256x128xf32>
    %6 = tpu.matmul %5, %4, %cst {dimension_numbers = #tpu.dot_dimension_numbers<[1], [0], [0], [1], [0, 0, 1, 1], [], []>} : vector<256x512xbf16>, vector<512x128xbf16>, vector<256x128xf32> -> vector<256x128xf32>
    %c0_5 = arith.constant 0 : index
    %c0_6 = arith.constant 0 : index
    %7 = vector.load %arg4[%c0_5, %c0_6] : memref<256x1xf32, #tpu.memory_space<vmem>>, vector<256x1xf32>
    %8 = vector.broadcast %7 : vector<256x1xf32> to vector<256x128xf32>
    %9 = arith.mulf %6, %8 : vector<256x128xf32>
    %10 = arith.truncf %9 : vector<256x128xf32> to vector<256x128xbf16>
    %c0_7 = arith.constant 0 : index
    %c0_8 = arith.constant 0 : index
    %11 = vector.load %arg6[%c0_7, %c0_8] : memref<128x256xbf16, #tpu.memory_space<vmem>>, vector<128x256xbf16>
    %cst_9 = arith.constant dense<0.000000e+00> : vector<256x256xf32>
    %12 = tpu.matmul %10, %11, %cst_9 {dimension_numbers = #tpu.dot_dimension_numbers<[1], [0], [0], [1], [0, 0, 1, 1], [], []>} : vector<256x128xbf16>, vector<128x256xbf16>, vector<256x256xf32> -> vector<256x256xf32>
    %c0_10 = arith.constant 0 : index
    %c0_11 = arith.constant 0 : index
    %13 = vector.load %arg7[%c0_10, %c0_11] : memref<1x256xf32, #tpu.memory_space<vmem>>, vector<1x256xf32>
    %14 = vector.broadcast %13 : vector<1x256xf32> to vector<256x256xf32>
    %15 = arith.addf %12, %14 : vector<256x256xf32>
    %cst_12 = arith.constant 0.000000e+00 : f32
    %16 = vector.broadcast %cst_12 : f32 to vector<256x256xf32>
    %17 = arith.maximumf %15, %16 : vector<256x256xf32>
    %18 = arith.truncf %17 : vector<256x256xf32> to vector<256x256xbf16>
    %c0_13 = arith.constant 0 : index
    %c0_14 = arith.constant 0 : index
    %19 = vector.load %arg8[%c0_13, %c0_14] : memref<256x128xbf16, #tpu.memory_space<vmem>>, vector<256x128xbf16>
    %cst_15 = arith.constant dense<0.000000e+00> : vector<256x128xf32>
    %20 = tpu.matmul %18, %19, %cst_15 {dimension_numbers = #tpu.dot_dimension_numbers<[1], [0], [0], [1], [0, 0, 1, 1], [], []>} : vector<256x256xbf16>, vector<256x128xbf16>, vector<256x128xf32> -> vector<256x128xf32>
    %c0_16 = arith.constant 0 : index
    %c0_17 = arith.constant 0 : index
    %21 = vector.load %arg5[%c0_16, %c0_17] : memref<256x1xf32, #tpu.memory_space<vmem>>, vector<256x1xf32>
    %22 = vector.broadcast %21 : vector<256x1xf32> to vector<256x128xf32>
    %23 = arith.mulf %20, %22 : vector<256x128xf32>
    %24 = arith.truncf %23 : vector<256x128xf32> to vector<256x128xbf16>
    %c0_18 = arith.constant 0 : index
    %c0_19 = arith.constant 0 : index
    %25 = vector.load %arg9[%c0_18, %c0_19] : memref<256x128xbf16, #tpu.memory_space<vmem>>, vector<256x128xbf16>
    tpu.vector_store %arg9[%c0_18, %c0_19], %24 {strides = array<i32>} : memref<256x128xbf16, #tpu.memory_space<vmem>>, vector<256x128xbf16>,
    return
  }
  func.func @transform_0(%arg0: i32) -> (i32, i32) {
    %c0_i32 = arith.constant 0 : i32
    %c0_i32_0 = arith.constant 0 : i32
    return %arg0, %c0_i32 : i32, i32
  }
  func.func @transform_1(%arg0: i32) -> (i32, i32) {
    %c0_i32 = arith.constant 0 : i32
    %c0_i32_0 = arith.constant 0 : i32
    %c0_i32_1 = arith.constant 0 : i32
    return %c0_i32, %c0_i32_0 : i32, i32
  }
  func.func @transform_2(%arg0: i32) -> (i32, i32) {
    %c0_i32 = arith.constant 0 : i32
    %c0_i32_0 = arith.constant 0 : i32
    %c0_i32_1 = arith.constant 0 : i32
    return %c0_i32, %c0_i32_0 : i32, i32
  }
  func.func @transform_3(%arg0: i32) -> (i32, i32) {
    %c0_i32 = arith.constant 0 : i32
    %c0_i32_0 = arith.constant 0 : i32
    return %arg0, %c0_i32 : i32, i32
  }
  func.func @transform_4(%arg0: i32) -> (i32, i32) {
    %c0_i32 = arith.constant 0 : i32
    %c0_i32_0 = arith.constant 0 : i32
    return %arg0, %c0_i32 : i32, i32
  }
  func.func @transform_5(%arg0: i32) -> (i32, i32) {
    %c0_i32 = arith.constant 0 : i32
    %c0_i32_0 = arith.constant 0 : i32
    %c0_i32_1 = arith.constant 0 : i32
    return %c0_i32, %c0_i32_0 : i32, i32
  }
  func.func @transform_6(%arg0: i32) -> (i32, i32) {
    %c0_i32 = arith.constant 0 : i32
    %c0_i32_0 = arith.constant 0 : i32
    %c0_i32_1 = arith.constant 0 : i32
    return %c0_i32, %c0_i32_0 : i32, i32
  }
  func.func @transform_7(%arg0: i32) -> (i32, i32) {
    %c0_i32 = arith.constant 0 : i32
    %c0_i32_0 = arith.constant 0 : i32
    %c0_i32_1 = arith.constant 0 : i32
    return %c0_i32, %c0_i32_0 : i32, i32
  }
  func.func @transform_8(%arg0: i32) -> (i32, i32) {
    %c0_i32 = arith.constant 0 : i32
    %c0_i32_0 = arith.constant 0 : i32
    return %arg0, %c0_i32 : i32, i32
  }
}

</mosaic_0001>

<bundles_post_ra>
// kernel: tpu_custom_call.1
= control target key start
LH: loop header
LB: loop body
LE: loop exit
PB: predicated region body
PF: predicated region fallthrough
CT: control target
= control target key end

     0   :  { %13 = vsyncpa [#allocation3], 0  ;;  %s4887_s0 = inlined_call_operand.vmem [shape: bf16[512,512], index: 0, kind: input, shape index: {}]   ;;  %s4888_s1 = inlined_call_operand.vmem [shape: f32[512,128], index: 1, kind: input, shape index: {}]   ;;  %s4889_s2 = inlined_call_operand.vmem [shape: f32[512,1], index: 2, kind: input, shape index: {}]   ;;  %s4890_s3 = inlined_call_operand.vmem [shape: f32[512,1], index: 3, kind: input, shape index: {}]   ;;  %s4891_s4 = inlined_call_operand.vmem [shape: f32[512,1], index: 4, kind: input, shape index: {}]   ;;  %s4892_s5 = inlined_call_operand.hbm [shape: bf16[128,256], index: 5, kind: input, shape index: {}]   ;;  %s4893_s6 = inlined_call_operand.vmem [shape: f32[1,256], index: 6, kind: input, shape index: {}]   ;;  %s4894_s7 = inlined_call_operand.hbm [shape: bf16[256,128], index: 7, kind: input, shape index: {}]   ;;  %s4895_s8 = inlined_call_operand.hbm [shape: bf16[512,128], index: 8, kind: output, shape index: {}]  }
   0x1   :  { %14 = vsyncpa [#allocation6], 0 }
   0x2   :  { %15 = vsyncpa [#allocation4], 0 }
   0x3   :  { %17 = vsyncpa [#allocation4 + $0x1], 0  ;;  %s4069_s27 = smov 0   ;;  %s4071_s28 = smov 0  }
   0x4   :  { %s4073_s29 = smov 0   ;;  %s4075_s30 = smov 0  }
   0x5 LB: > { %4900 = sst [smem:[#allocation11_spill]] %s4008_s29  ;;  %s4090_s9 = sadd.s32 4294967295, %s4012_s30   ;;  %s4012_s30 = sphi %s4075_s30, %s4917_s30   ;;  %s4008_s29 = sphi %s4073_s29, %s4914_s29   ;;  %s4004_s28 = sphi %s4071_s28, %s4916_s28   ;;  %s4000_s27 = sphi %s4069_s27, %s4915_s27  }
   0x6   : > { %s3067_s10 = sadd.s32 4294967294, %s4012_s30   ;;  %s4094_s11 = sadd.s32 1, %s4012_s30  }
   0x7   : > { %s213_s12 = sadd.s32 1, %s4008_s29  ;;  %s210_s13 = ssub.s32 %s4012_s30, %s4094_s11 }
   0x8   : > { %p223_p0 = scmp.ne.s32.totalorder %s4008_s29, %s4004_s28  ;;  %p211_p1 = scmp.eq.s32.totalorder %s210_s13, 0 }
   0x9   : > { %p224_p2 = scmp.eq.s32.totalorder %s4090_s9, 1  ;;  %p229_p3 = scmp.ne.s32.totalorder %s4004_s28, %s4000_s27 }
   0xa   : > { %p230_p4 = scmp.eq.s32.totalorder %s3067_s10, 1  ;;  %p3068_p7 = scmp.ge.s32.totalorder %s4012_s30, 1 }
   0xb   : > { %s4105_s14 = scalar_select %p211_p1, %s4008_s29, %s213_s12  }
   0xc   : > { %p4107_p5 = por %p224_p2, %p223_p0  ;;  %p4111_p6 = por %p230_p4, %p229_p3 }
   0xd   : > { %4901 = sst [smem:[#allocation12_spill]] %s4105_s14  ;;  %p237_p8 = scmp.lt.s32.totalorder %s4012_s30, 3 }
   0xe   : > { %s4902_s15 = scalar_select %p4107_p5, 1, 0 }
   0xf   : > { %s4903_s16 = scalar_select %p4111_p6, 1, 0 }
  0x10   : > { %p4896_p9 = scmp.eq.s32.totalorder %s4090_s9, 0  ;;  %p4118_p10 = pnand %p3068_p7, %p237_p8 }
  0x11   : > { %s4014_s18 = smov [#allocation2]   ;;  %s4015_s21 = smov [#allocation5]  }
  0x12   : > { %s4904_s17 = scalar_select %p4118_p10, 1, 0 }
  0x13   : > { %s255_s19 = sshll.u32 %s4014_s18, 4  ;;  %p3691_p11 = pneg %p4118_p10  ;;  %s256_s19 = int_to_ptr.vmem [resolvable:$true] %s255_s19 }
  0x14   : > { %s271_s22 = sshll.u32 %s4015_s21, 4  ;;  %s3886_s25 = scalar_lea.hbm %s4892_s5, 2048  ;;  %s4130_s22 = int_to_ptr.vmem [resolvable:$true] %s271_s22 }
  0x15   : > { %p4126_p12 = pnand %p4896_p9, %p3691_p11  ;;  %p3887_p13 = scmp.ne.s32.totalorder %s4892_s5, %s3886_s25 }
  0x16   : > { %p3893_p3 = scmp.lt.u32.totalorder %s3886_s25, %s4892_s5 }
  0x17   : > { %p3888_p0 = pneg %p4126_p12 }
  0x19   : > { %p3889_p1 = pnand %p3888_p0, %p3887_p13 }
  0x1b   : > { %p3890_p2 = pneg %p3889_p1 }
  0x1d   : > { %p3895_p4 = pnand %p3893_p3, %p3890_p2 }
  0x1f   : > { %3898 = shalt.err (!%p3895_p4)
}
  0x20   : > { %s3899_s18 = scalar_lea.vmem %s256_s19, 2048  ;;  %p3907_p9 = scmp.lt.s32.totalorder %s256_s19, %s256_s19 }
  0x21   : > { %p3900_p7 = scmp.ne.s32.totalorder %s256_s19, %s3899_s18  ;;  %p3908_p6 = scmp.lt.s32.totalorder %s3899_s18, %s3899_s18 }
  0x23   : > { %p3902_p8 = pnand %p3900_p7, %p3888_p0  ;;  %p3909_p5 = por %p3908_p6, %p3907_p9 }
  0x25   : > { %p3903_p11 = pneg %p3902_p8 }
  0x27   : > { %p3910_p10 = pnand %p3909_p5, %p3903_p11 }
  0x29   : > { %3913 = shalt.err (!%p3910_p10)
}
  0x2a   : > { %s4016_s21 = smov 128   ;;  %s4017_s23 = smov 8  }
  0x2b   : > { %3694 = dma.hbm_to_vmem [thread:$0]  (!%p4126_p12), %s4892_s5, 2048, %s256_s19, [#allocation3], %s4016_s21, %s4016_s21, %s4017_s23  }
  0x2c   : > { %s3914_s12 = scalar_lea.hbm %s4894_s7, 2048 }
  0x2d   : > { %p3915_p13 = scmp.ne.s32.totalorder %s4894_s7, %s3914_s12  ;;  %p3921_p9 = scmp.lt.u32.totalorder %s3914_s12, %s4894_s7 }
  0x2f   : > { %p3917_p5 = pnand %p3915_p13, %p3888_p0 }
  0x31   : > { %p3918_p6 = pneg %p3917_p5 }
  0x33   : > { %p3923_p10 = pnand %p3921_p9, %p3918_p6 }
  0x35   : > { %3926 = shalt.err (!%p3923_p10)
}
  0x36   : > { %s3927_s19 = scalar_lea.vmem %s4130_s22, 2048  ;;  %p3935_p4 = scmp.lt.s32.totalorder %s4130_s22, %s4130_s22 }
  0x37   : > { %p3928_p1 = scmp.ne.s32.totalorder %s4130_s22, %s3927_s19  ;;  %p3936_p7 = scmp.lt.s32.totalorder %s3927_s19, %s3927_s19 }
  0x39   : > { %p3930_p2 = pnand %p3928_p1, %p3888_p0  ;;  %p3937_p8 = por %p3936_p7, %p3935_p4 }
  0x3b   : > { %p3931_p3 = pneg %p3930_p2 }
  0x3d   : > { %p3938_p11 = pnand %p3937_p8, %p3931_p3 }
  0x3f   : > { %3941 = shalt.err (!%p3938_p11)
}
  0x40   : > { %s4018_s29 = smov 64   ;;  %s4019_s14 = smov 4  }
  0x41   : > { %3697 = dma.hbm_to_vmem [thread:$0]  (!%p4126_p12), %s4894_s7, 2048, %s4130_s22, [#allocation6], %s4018_s29, %s4018_s29, %s4019_s14  }
  0x42   : > { %p4906_p13 = scmp.ne.s32.totalorder %s4904_s17, 0 }
  0x43   : > { %p4907_p0 = scmp.eq.s32.totalorder (!%p4906_p13), %s4090_s9, 0 }
  0x44   : > { %315 = sbr.rel (%p4906_p13) target bundleno = 1141 (0x475), region = 52 }
  0x4b   : > { %3987 = dma.done.wait (%p4907_p0), [#allocation3], 2048   ;;  %p4908_p5 = pmov %p4907_p0 }
  0x4c   : > { %p4909_p6 = pmov %p4907_p0 }
  0x4d   : > { %3989 = vsyncadd (%p4908_p5), [#allocation3], 4294965248 }
  0x4e   : > { %3991 = dma.done.wait (%p4909_p6), [#allocation6], 2048   ;;  %p4910_p9 = pmov %p4907_p0 }
  0x4f   : > { %v4020_v0 = vmov 0   ;;  %v497_v1 = vld [vmem:[%s4889_s2 + $0x180] sm:$0xff]  ;;  %v498_v3 = vld [vmem:[%s4889_s2 + $0x188] sm:$0xff]  ;;  %v468_v9 = vld [vmem:[%s4889_s2 + $0x98] sm:$0xff]  ;;  %s3076_s18 = sshll.u32 %s4090_s9, 5  ;;  %s361_s20 = sand.u32 1, %s4004_s28  }
  0x50   : > { %3993 = vsyncadd (%p4910_p9), [#allocation6], 4294965248  ;;  %3749 = vset.pattern.permute.xlu1 %v4020_v0  ;;  %3748 = vset.pattern.permute.xlu0 %v4020_v0  ;;  %v465_v2 = vld [vmem:[%s4889_s2 + $0x80] sm:$0xff]  ;;  %v466_v4 = vld [vmem:[%s4889_s2 + $0x88] sm:$0xff]  ;;  %p365_p12 = scmp.lt.s32.totalorder %s3076_s18, 63  ;;  %s3075_s25 = sshll.u32 %s361_s20, 7 }
  0x51   : > { %755 = vperm.xlu1 %3749, %v497_v1   ;;  %595 = vperm.xlu0 %3748, %v465_v2   ;;  %v450_v5 = vld [vmem:[%s4889_s2 + $0x8] sm:$0xff]  ;;  %v449_v6 = vld [vmem:[%s4889_s2] sm:$0xff]  ;;  %v467_v10 = vld [vmem:[%s4889_s2 + $0x90] sm:$0xff]  ;;  %s4817_s26 = scalar_lea.vmem [#allocation7], %s3075_s25  ;;  %s4846_s13 = scalar_lea.sflag [#allocation4], %s361_s20 }
  0x52   : > { %v482_v7 = vld [vmem:[%s4889_s2 + $0x108] sm:$0xff]  ;;  %v481_v8 = vld [vmem:[%s4889_s2 + $0x100] sm:$0xff]  ;;  %v500_v11 = vld [vmem:[%s4889_s2 + $0x198] sm:$0xff]  ;;  %s4919_s18 = smov (!%p365_p12, %s3076_s18), 63  ;;  %p4911_p1 = scmp.ne.s32.totalorder %s4902_s15, 0 }
  0x53   : > { %v499_v12 = vld [vmem:[%s4889_s2 + $0x190] sm:$0xff]  ;;  %v452_v13 = vld [vmem:[%s4889_s2 + $0x18] sm:$0xff]  ;;  %s3216_s24 = sshll.u32 %s4919_s18, 4  ;;  %v470_v17 = vld [vmem:[%s4889_s2 + $0xa8] sm:$0xff]  ;;  %s3080_s12 = sshll.u32 %s4919_s18, 3 }
  0x54   : > { %v451_v14 = vld [vmem:[%s4889_s2 + $0x10] sm:$0xff]  ;;  %v484_v15 = vld [vmem:[%s4889_s2 + $0x118] sm:$0xff]  ;;  %v469_v18 = vld [vmem:[%s4889_s2 + $0xa0] sm:$0xff]  ;;  %s4252_s29 = scalar_lea.vmem %s4887_s0, %s3216_s24  ;;  %s4398_s17 = scalar_lea.vmem %s4890_s3, %s3080_s12 }
  0x55   : > { %760 = vperm.xlu1 %3749, %v498_v3   ;;  %600 = vperm.xlu0 %3748, %v466_v4   ;;  %v483_v16 = vld [vmem:[%s4889_s2 + $0x110] sm:$0xff]  ;;  %v502_v19 = vld [vmem:[%s4889_s2 + $0x1a8] sm:$0xff]  ;;  %v501_v20 = vld [vmem:[%s4889_s2 + $0x1a0] sm:$0xff]  ;;  %s4535_s22 = scalar_lea.vmem %s4891_s4, %s3080_s12  ;;  %s3249_s18 = sshll.u32 %s4090_s9, 11 }
  0x56   : > { %v454_v21 = vld [vmem:[%s4889_s2 + $0x28] sm:$0xff]  ;;  %v453_v22 = vld [vmem:[%s4889_s2 + $0x20] sm:$0xff]  ;;  %v472_v25 = vld [vmem:[%s4889_s2 + $0xb8] sm:$0xff]  ;;  %s4839_s10 = scalar_lea.hbm %s4895_s8, %s3249_s18  ;;  %s4021_s19 = smov [#allocation7]  }
  0x57   : > { %v486_v23 = vld [vmem:[%s4889_s2 + $0x128] sm:$0xff]  ;;  %v485_v24 = vld [vmem:[%s4889_s2 + $0x120] sm:$0xff]  ;;  %v471_v26 = vld [vmem:[%s4889_s2 + $0xb0] sm:$0xff]  ;;  %s3946_s14 = sshll.u32 %s4021_s19, 4  ;;  %s3947_s14 = int_to_ptr.vmem [resolvable:$false] %s3946_s14 }
  0x58   : > { %v504_v27 = vld [vmem:[%s4889_s2 + $0x1b8] sm:$0xff]  ;;  %v503_v28 = vld [vmem:[%s4889_s2 + $0x1b0] sm:$0xff]  ;;  %v474_v33 = vld [vmem:[%s4889_s2 + $0xc8] sm:$0xff]  ;;  %s3948_s21 = scalar_lea.vmem %s3947_s14, 4096 }
  0x59   : > { %520 = vperm.xlu1 %3749, %v450_v5   ;;  %515 = vperm.xlu0 %3748, %v449_v6   ;;  %v456_v29 = vld [vmem:[%s4889_s2 + $0x38] sm:$0xff]  ;;  %v455_v30 = vld [vmem:[%s4889_s2 + $0x30] sm:$0xff]  ;;  %v473_v34 = vld [vmem:[%s4889_s2 + $0xc0] sm:$0xff] }
  0x5a   : > { %v488_v31 = vld [vmem:[%s4889_s2 + $0x138] sm:$0xff]  ;;  %v487_v32 = vld [vmem:[%s4889_s2 + $0x130] sm:$0xff]  ;;  %v506_v35 = vld [vmem:[%s4889_s2 + $0x1c8] sm:$0xff] }
  0x5b   : > { %v505_v36 = vld [vmem:[%s4889_s2 + $0x1c0] sm:$0xff]  ;;  %v458_v37 = vld [vmem:[%s4889_s2 + $0x48] sm:$0xff]  ;;  %v476_v41 = vld [vmem:[%s4889_s2 + $0xd8] sm:$0xff] }
  0x5c   : > { %v457_v38 = vld [vmem:[%s4889_s2 + $0x40] sm:$0xff]  ;;  %v490_v39 = vld [vmem:[%s4889_s2 + $0x148] sm:$0xff]  ;;  %v475_v42 = vld [vmem:[%s4889_s2 + $0xd0] sm:$0xff] }
  0x5d   : > { %680 = vperm.xlu1 %3749, %v482_v7   ;;  %675 = vperm.xlu0 %3748, %v481_v8   ;;  %v489_v40 = vld [vmem:[%s4889_s2 + $0x140] sm:$0xff]  ;;  %v508_v43 = vld [vmem:[%s4889_s2 + $0x1d8] sm:$0xff]  ;;  %v507_v44 = vld [vmem:[%s4889_s2 + $0x1d0] sm:$0xff] }
  0x5e   : > { %v460_v45 = vld [vmem:[%s4889_s2 + $0x58] sm:$0xff]  ;;  %v459_v46 = vld [vmem:[%s4889_s2 + $0x50] sm:$0xff]  ;;  %v478_v49 = vld [vmem:[%s4889_s2 + $0xe8] sm:$0xff] }
  0x5f   : > { %v492_v47 = vld [vmem:[%s4889_s2 + $0x158] sm:$0xff]  ;;  %v491_v48 = vld [vmem:[%s4889_s2 + $0x150] sm:$0xff]  ;;  %v477_v50 = vld [vmem:[%s4889_s2 + $0xe0] sm:$0xff] }
  0x60   : > { %v510_v51 = vld [vmem:[%s4889_s2 + $0x1e8] sm:$0xff]  ;;  %v509_v52 = vld [vmem:[%s4889_s2 + $0x1e0] sm:$0xff]  ;;  %v480_v57 = vld [vmem:[%s4889_s2 + $0xf8] sm:$0xff] }
  0x61   : > { %610 = vperm.xlu1 %3749, %v468_v9   ;;  %605 = vperm.xlu0 %3748, %v467_v10   ;;  %v462_v53 = vld [vmem:[%s4889_s2 + $0x68] sm:$0xff]  ;;  %v461_v54 = vld [vmem:[%s4889_s2 + $0x60] sm:$0xff]  ;;  %v479_v58 = vld [vmem:[%s4889_s2 + $0xf0] sm:$0xff] }
  0x62   : > { %v494_v55 = vld [vmem:[%s4889_s2 + $0x168] sm:$0xff]  ;;  %v493_v56 = vld [vmem:[%s4889_s2 + $0x160] sm:$0xff]  ;;  %v512_v59 = vld [vmem:[%s4889_s2 + $0x1f8] sm:$0xff] }
  0x63   : > { %v511_v60 = vld [vmem:[%s4889_s2 + $0x1f0] sm:$0xff]  ;;  %v464_v61 = vld [vmem:[%s4889_s2 + $0x78] sm:$0xff]  ;;  %v1636_v2 = vld [vmem:[%s4398_s17 + $0x8] sm:$0xff] }
  0x64   : > { %v463_v62 = vld [vmem:[%s4889_s2 + $0x70] sm:$0xff]  ;;  %v496_v63 = vld [vmem:[%s4889_s2 + $0x178] sm:$0xff]  ;;  %v1635_v3 = vld [vmem:[%s4398_s17] sm:$0xff] }
  0x65   : > { %770 = vperm.xlu1 %3749, %v500_v11   ;;  %765 = vperm.xlu0 %3748, %v499_v12   ;;  %v495_v1 = vld [vmem:[%s4889_s2 + $0x170] sm:$0xff]  ;;  %v433_v6 = vld [vmem:[%s4888_s1 + $0x180] sm:$0xff]  ;;  %v434_v9 = vld [vmem:[%s4888_s1 + $0x188] sm:$0xff] }
  0x66   : > { %v3752_v4 = vld [vmem:[%s4252_s29 + $0x4] ss:$16 sps:$4 sm:$0xff]   ;;  %v3755_v10 = vld [vmem:[%s4252_s29 + $0xc] ss:$16 sps:$4 sm:$0xff]  }
  0x67   : > { %v401_v8 = vld [vmem:[%s4888_s1 + $0x80] sm:$0xff]  ;;  %v402_v11 = vld [vmem:[%s4888_s1 + $0x88] sm:$0xff]  ;;  %v1638_v12 = vld [vmem:[%s4398_s17 + $0x18] sm:$0xff]  ;;  %1345 = vmatprep.mubr.bf16.mxu0 %v3752_v4  ;;  %1506 = vmatprep.mubr.bf16.mxu1 %v3755_v10 }
  0x68   : > { %v419_v4 = vld [vmem:[%s4888_s1 + $0x110] sm:$0xff] }
  0x69   : > { %530 = vperm.xlu1 %3749, %v452_v13   ;;  %525 = vperm.xlu0 %3748, %v451_v14   ;;  %v1637_v13 = vld [vmem:[%s4398_s17 + $0x10] sm:$0xff] }
  0x6d   : > { %690 = vperm.xlu1 %3749, %v484_v15   ;;  %685 = vperm.xlu0 %3748, %v483_v16  }
  0x71   : > { %620 = vperm.xlu1 %3749, %v470_v17   ;;  %615 = vperm.xlu0 %3748, %v469_v18  }
  0x75   : > { %780 = vperm.xlu1 %3749, %v502_v19   ;;  %775 = vperm.xlu0 %3748, %v501_v20   ;;  %v386_v20 = vld [vmem:[%s4888_s1 + $0x8] sm:$0xff] }
  0x79   : > { %540 = vperm.xlu1 %3749, %v454_v21   ;;  %535 = vperm.xlu0 %3748, %v453_v22   ;;  %v385_v21 = vld [vmem:[%s4888_s1] sm:$0xff]  ;;  %v1640_v22 = vld [vmem:[%s4398_s17 + $0x28] sm:$0xff] }
  0x7d   : > { %700 = vperm.xlu1 %3749, %v486_v23   ;;  %695 = vperm.xlu0 %3748, %v485_v24   ;;  %v1639_v23 = vld [vmem:[%s4398_s17 + $0x20] sm:$0xff] }
  0x81   : > { %630 = vperm.xlu1 %3749, %v472_v25   ;;  %625 = vperm.xlu0 %3748, %v471_v26  }
  0x85   : > { %790 = vperm.xlu1 %3749, %v504_v27   ;;  %785 = vperm.xlu0 %3748, %v503_v28  }
  0x89   : > { %550 = vperm.xlu1 %3749, %v456_v29   ;;  %545 = vperm.xlu0 %3748, %v455_v30   ;;  %v418_v30 = vld [vmem:[%s4888_s1 + $0x108] sm:$0xff] }
  0x8d   : > { %710 = vperm.xlu1 %3749, %v488_v31   ;;  %705 = vperm.xlu0 %3748, %v487_v32   ;;  %v417_v31 = vld [vmem:[%s4888_s1 + $0x100] sm:$0xff]  ;;  %v1642_v32 = vld [vmem:[%s4398_s17 + $0x38] sm:$0xff] }
  0x91   : > { %640 = vperm.xlu1 %3749, %v474_v33   ;;  %635 = vperm.xlu0 %3748, %v473_v34   ;;  %v1641_v33 = vld [vmem:[%s4398_s17 + $0x30] sm:$0xff] }
  0x95   : > { %800 = vperm.xlu1 %3749, %v506_v35   ;;  %795 = vperm.xlu0 %3748, %v505_v36  }
  0x99   : > { %560 = vperm.xlu1 %3749, %v458_v37   ;;  %555 = vperm.xlu0 %3748, %v457_v38  }
  0x9d   : > { %720 = vperm.xlu1 %3749, %v490_v39   ;;  %715 = vperm.xlu0 %3748, %v489_v40   ;;  %v404_v39 = vld [vmem:[%s4888_s1 + $0x98] sm:$0xff]  ;;  %v403_v40 = vld [vmem:[%s4888_s1 + $0x90] sm:$0xff] }
  0xa1   : > { %650 = vperm.xlu1 %3749, %v476_v41   ;;  %645 = vperm.xlu0 %3748, %v475_v42   ;;  %v1644_v41 = vld [vmem:[%s4398_s17 + $0x48] sm:$0xff]  ;;  %v1643_v42 = vld [vmem:[%s4398_s17 + $0x40] sm:$0xff] }
  0xa5   : > { %810 = vperm.xlu1 %3749, %v508_v43   ;;  %805 = vperm.xlu0 %3748, %v507_v44  }
  0xa9   : > { %570 = vperm.xlu1 %3749, %v460_v45   ;;  %565 = vperm.xlu0 %3748, %v459_v46  }
  0xad   : > { %730 = vperm.xlu1 %3749, %v492_v47   ;;  %725 = vperm.xlu0 %3748, %v491_v48   ;;  %v436_v48 = vld [vmem:[%s4888_s1 + $0x198] sm:$0xff] }
  0xb1   : > { %660 = vperm.xlu1 %3749, %v478_v49   ;;  %655 = vperm.xlu0 %3748, %v477_v50   ;;  %v435_v49 = vld [vmem:[%s4888_s1 + $0x190] sm:$0xff]  ;;  %v1646_v50 = vld [vmem:[%s4398_s17 + $0x58] sm:$0xff] }
  0xb5   : > { %820 = vperm.xlu1 %3749, %v510_v51   ;;  %815 = vperm.xlu0 %3748, %v509_v52   ;;  %v1645_v51 = vld [vmem:[%s4398_s17 + $0x50] sm:$0xff] }
  0xb9   : > { %580 = vperm.xlu1 %3749, %v462_v53   ;;  %575 = vperm.xlu0 %3748, %v461_v54  }
  0xbd   : > { %740 = vperm.xlu1 %3749, %v494_v55   ;;  %735 = vperm.xlu0 %3748, %v493_v56  }
  0xc1   : > { %670 = vperm.xlu1 %3749, %v480_v57   ;;  %665 = vperm.xlu0 %3748, %v479_v58   ;;  %v388_v57 = vld [vmem:[%s4888_s1 + $0x18] sm:$0xff]  ;;  %v387_v58 = vld [vmem:[%s4888_s1 + $0x10] sm:$0xff] }
  0xc5   : > { %830 = vperm.xlu1 %3749, %v512_v59   ;;  %825 = vperm.xlu0 %3748, %v511_v60   ;;  %v1648_v59 = vld [vmem:[%s4398_s17 + $0x68] sm:$0xff]  ;;  %v1647_v60 = vld [vmem:[%s4398_s17 + $0x60] sm:$0xff] }
  0xc9   : > { %590 = vperm.xlu1 %3749, %v464_v61   ;;  %585 = vperm.xlu0 %3748, %v463_v62  }
  0xcd   : > { %750 = vperm.xlu1 %3749, %v496_v63   ;;  %745 = vperm.xlu0 %3748, %v495_v1  }
  0xd0   : > { %v756_v5 = vpop.permute.xlu1 %755  ;;  %v596_v7 = vpop.permute.xlu0 %595 }
  0xd1   : > { %1674 = vperm.xlu1 %3749, %v1636_v2   ;;  %1669 = vperm.xlu0 %3748, %v1635_v3   ;;  %v881_v14 = vmul.f32 %v756_v5, %v433_v6  ;;  %v849_v17 = vmul.f32 %v596_v7, %v401_v8  ;;  %v420_v3 = vld [vmem:[%s4888_s1 + $0x118] sm:$0xff]  ;;  %v1649_v6 = vld [vmem:[%s4398_s17 + $0x70] sm:$0xff] }
  0xd2   : > { %v1650_v5 = vld [vmem:[%s4398_s17 + $0x78] sm:$0xff] }
  0xd4   : > { %v761_v15 = vpop.permute.xlu1 %760  ;;  %v601_v16 = vpop.permute.xlu0 %600 }
  0xd5   : > { %v882_v18 = vmul.f32 %v761_v15, %v434_v9  ;;  %v850_v19 = vmul.f32 %v601_v16, %v402_v11  ;;  %1684 = vperm.xlu1 %3749, %v1638_v12   ;;  %1679 = vperm.xlu0 %3748, %v1637_v13   ;;  %v406_v12 = vld [vmem:[%s4888_s1 + $0xa8] sm:$0xff]  ;;  %v405_v13 = vld [vmem:[%s4888_s1 + $0xa0] sm:$0xff] }
  0xd6   : > { %v1651_v15 = vld [vmem:[%s4398_s17 + $0x80] sm:$0xff] }
  0xd7   : > { %v905_v24 = vpack.c.bf16 %v850_v19, %v849_v17  ;;  %v921_v25 = vpack.c.bf16 %v882_v18, %v881_v14  ;;  %v1652_v14 = vld [vmem:[%s4398_s17 + $0x88] sm:$0xff] }
  0xd8   : > { %v521_v26 = vpop.permute.xlu1 %520  ;;  %v516_v27 = vpop.permute.xlu0 %515 }
  0xd9   : > { %v834_v28 = vmul.f32 %v521_v26, %v386_v20  ;;  %v833_v29 = vmul.f32 %v516_v27, %v385_v21  ;;  %1694 = vperm.xlu1 %3749, %v1640_v22   ;;  %1689 = vperm.xlu0 %3748, %v1639_v23   ;;  %v438_v21 = vld [vmem:[%s4888_s1 + $0x1a8] sm:$0xff]  ;;  %v437_v22 = vld [vmem:[%s4888_s1 + $0x1a0] sm:$0xff]  ;;  %v1654_v23 = vld [vmem:[%s4398_s17 + $0x98] sm:$0xff] }
  0xda   : > { %3345 = vmatprep.subr.bf16.mxu0 %v905_v24  ;;  %3457 = vmatprep.subr.bf16.mxu1 %v921_v25  ;;  %v1653_v24 = vld [vmem:[%s4398_s17 + $0x90] sm:$0xff] }
  0xdb   : > { %v897_v34 = vpack.c.bf16 %v834_v28, %v833_v29 }
  0xdc   : > { %v681_v35 = vpop.permute.xlu1 %680  ;;  %v676_v36 = vpop.permute.xlu0 %675 }
  0xdd   : > { %v866_v37 = vmul.f32 %v681_v35, %v418_v30  ;;  %v865_v38 = vmul.f32 %v676_v36, %v417_v31  ;;  %1704 = vperm.xlu1 %3749, %v1642_v32   ;;  %1699 = vperm.xlu0 %3748, %v1641_v33   ;;  %v390_v30 = vld [vmem:[%s4888_s1 + $0x28] sm:$0xff]  ;;  %v389_v31 = vld [vmem:[%s4888_s1 + $0x20] sm:$0xff] }
  0xde   : > { %3346 = vmatpush3.bf16.msra.mxu0 %v897_v34  ;;  %v1656_v32 = vld [vmem:[%s4398_s17 + $0xa8] sm:$0xff]  ;;  %v1655_v33 = vld [vmem:[%s4398_s17 + $0xa0] sm:$0xff] }
  0xdf   : > { %v913_v43 = vpack.c.bf16 %v866_v37, %v865_v38 }
  0xe0   : > { %v611_v44 = vpop.permute.xlu1 %610  ;;  %v606_v45 = vpop.permute.xlu0 %605 }
  0xe1   : > { %v852_v46 = vmul.f32 %v611_v44, %v404_v39  ;;  %v851_v47 = vmul.f32 %v606_v45, %v403_v40  ;;  %1714 = vperm.xlu1 %3749, %v1644_v41   ;;  %1709 = vperm.xlu0 %3748, %v1643_v42   ;;  %v422_v39 = vld [vmem:[%s4888_s1 + $0x128] sm:$0xff]  ;;  %v421_v40 = vld [vmem:[%s4888_s1 + $0x120] sm:$0xff]  ;;  %v1658_v41 = vld [vmem:[%s4398_s17 + $0xb8] sm:$0xff] }
  0xe2   : > { %3458 = vmatpush3.bf16.msra.mxu1 %v913_v43  ;;  %v1657_v42 = vld [vmem:[%s4398_s17 + $0xb0] sm:$0xff] }
  0xe3   : > { %v906_v52 = vpack.c.bf16 %v852_v46, %v851_v47 }
  0xe4   : > { %v771_v53 = vpop.permute.xlu1 %770  ;;  %v766_v54 = vpop.permute.xlu0 %765 }
  0xe5   : > { %v884_v55 = vmul.f32 %v771_v53, %v436_v48  ;;  %v883_v56 = vmul.f32 %v766_v54, %v435_v49  ;;  %1724 = vperm.xlu1 %3749, %v1646_v50   ;;  %1719 = vperm.xlu0 %3748, %v1645_v51   ;;  %v408_v48 = vld [vmem:[%s4888_s1 + $0xb8] sm:$0xff]  ;;  %v407_v49 = vld [vmem:[%s4888_s1 + $0xb0] sm:$0xff]  ;;  %v1660_v50 = vld [vmem:[%s4398_s17 + $0xc8] sm:$0xff] }
  0xe6   : > { %3347 = vmatprep.subr.bf16.mxu0 %v906_v52  ;;  %v1659_v51 = vld [vmem:[%s4398_s17 + $0xc0] sm:$0xff] }
  0xe7   : > { %v922_v61 = vpack.c.bf16 %v884_v55, %v883_v56 }
  0xe8   : > { %v531_v62 = vpop.permute.xlu1 %530  ;;  %v526_v63 = vpop.permute.xlu0 %525 }
  0xe9   : > { %v836_v1 = vmul.f32 %v531_v62, %v388_v57  ;;  %v835_v2 = vmul.f32 %v526_v63, %v387_v58  ;;  %1734 = vperm.xlu1 %3749, %v1648_v59   ;;  %1729 = vperm.xlu0 %3748, %v1647_v60   ;;  %v440_v57 = vld [vmem:[%s4888_s1 + $0x1b8] sm:$0xff]  ;;  %v439_v58 = vld [vmem:[%s4888_s1 + $0x1b0] sm:$0xff] }
  0xea   : > { %3459 = vmatprep.subr.bf16.mxu1 %v922_v61  ;;  %v1662_v59 = vld [vmem:[%s4398_s17 + $0xd8] sm:$0xff]  ;;  %v1661_v60 = vld [vmem:[%s4398_s17 + $0xd0] sm:$0xff] }
  0xeb   : > { %v898_v7 = vpack.c.bf16 %v836_v1, %v835_v2 }
  0xec   : > { %v691_v8 = vpop.permute.xlu1 %690  ;;  %v686_v9 = vpop.permute.xlu0 %685 }
  0xed   : > { %v868_v10 = vmul.f32 %v691_v8, %v420_v3  ;;  %v867_v11 = vmul.f32 %v686_v9, %v419_v4  ;;  %1744 = vperm.xlu1 %3749, %v1650_v5   ;;  %1739 = vperm.xlu0 %3748, %v1649_v6   ;;  %v392_v3 = vld [vmem:[%s4888_s1 + $0x38] sm:$0xff]  ;;  %v391_v4 = vld [vmem:[%s4888_s1 + $0x30] sm:$0xff]  ;;  %v1664_v5 = vld [vmem:[%s4398_s17 + $0xe8] sm:$0xff] }
  0xee   : > { %3348 = vmatpush3.bf16.msra.mxu0 %v898_v7  ;;  %v1663_v6 = vld [vmem:[%s4398_s17 + $0xe0] sm:$0xff] }
  0xef   : > { %v914_v16 = vpack.c.bf16 %v868_v10, %v867_v11 }
  0xf0   : > { %v621_v17 = vpop.permute.xlu1 %620  ;;  %v616_v18 = vpop.permute.xlu0 %615 }
  0xf1   : > { %v854_v19 = vmul.f32 %v621_v17, %v406_v12  ;;  %v853_v20 = vmul.f32 %v616_v18, %v405_v13  ;;  %1754 = vperm.xlu1 %3749, %v1652_v14   ;;  %1749 = vperm.xlu0 %3748, %v1651_v15   ;;  %v424_v12 = vld [vmem:[%s4888_s1 + $0x138] sm:$0xff]  ;;  %v423_v13 = vld [vmem:[%s4888_s1 + $0x130] sm:$0xff] }
  0xf2   : > { %3460 = vmatpush3.bf16.msra.mxu1 %v914_v16  ;;  %v1666_v14 = vld [vmem:[%s4398_s17 + $0xf8] sm:$0xff]  ;;  %v1665_v15 = vld [vmem:[%s4398_s17 + $0xf0] sm:$0xff]  ;;  %s2959_s17 = sshll.u32 %s4817_s26, 4  ;;  %s4841_s17 = int_to_ptr.vmem [resolvable:$true] %s2959_s17 }
  0xf3   : > { %v907_v25 = vpack.c.bf16 %v854_v19, %v853_v20  ;;  %s3942_s9 = scalar_lea.vmem %s4841_s17, 2048  ;;  %p3949_p4 = scmp.lt.s32.totalorder %s4841_s17, %s3947_s14 }
  0xf4   : > { %v781_v26 = vpop.permute.xlu1 %780  ;;  %v776_v27 = vpop.permute.xlu0 %775  ;;  %p3943_p10 = scmp.ne.s32.totalorder %s4841_s17, %s3942_s9  ;;  %p3950_p7 = scmp.lt.s32.totalorder %s3948_s21, %s3942_s9 }
  0xf5   : > { %v886_v28 = vmul.f32 %v781_v26, %v438_v21  ;;  %v885_v29 = vmul.f32 %v776_v27, %v437_v22  ;;  %1764 = vperm.xlu1 %3749, %v1654_v23   ;;  %1759 = vperm.xlu0 %3748, %v1653_v24   ;;  %v410_v21 = vld [vmem:[%s4888_s1 + $0xc8] sm:$0xff]  ;;  %v409_v22 = vld [vmem:[%s4888_s1 + $0xc0] sm:$0xff] }
  0xf6   : > { %3349 = vmatprep.subr.bf16.mxu0 %v907_v25  ;;  %v2562_v23 = vld [vmem:[%s4535_s22 + $0x8] sm:$0xff]  ;;  %v2561_v24 = vld [vmem:[%s4535_s22] sm:$0xff]  ;;  %p3944_p2 = pnand %p3943_p10, %p4911_p1  ;;  %p3951_p8 = por %p3950_p7, %p3949_p4 }
  0xf7   : > { %v923_v34 = vpack.c.bf16 %v886_v28, %v885_v29 }
  0xf8   : > { %v541_v35 = vpop.permute.xlu1 %540  ;;  %v536_v36 = vpop.permute.xlu0 %535  ;;  %p3945_p3 = pneg %p3944_p2 }
  0xf9   : > { %v838_v37 = vmul.f32 %v541_v35, %v390_v30  ;;  %v837_v38 = vmul.f32 %v536_v36, %v389_v31  ;;  %1774 = vperm.xlu1 %3749, %v1656_v32   ;;  %1769 = vperm.xlu0 %3748, %v1655_v33   ;;  %v442_v30 = vld [vmem:[%s4888_s1 + $0x1c8] sm:$0xff]  ;;  %v441_v31 = vld [vmem:[%s4888_s1 + $0x1c0] sm:$0xff]  ;;  %v2564_v32 = vld [vmem:[%s4535_s22 + $0x18] sm:$0xff] }
  0xfa   : > { %3461 = vmatprep.subr.bf16.mxu1 %v923_v34  ;;  %v2563_v33 = vld [vmem:[%s4535_s22 + $0x10] sm:$0xff]  ;;  %p3952_p11 = pnand %p3951_p8, %p3945_p3 }
  0xfb   : > { %v899_v43 = vpack.c.bf16 %v838_v37, %v837_v38 }
  0xfc   : > { %v701_v44 = vpop.permute.xlu1 %700  ;;  %v696_v45 = vpop.permute.xlu0 %695 }
  0xfd   : > { %v870_v46 = vmul.f32 %v701_v44, %v422_v39  ;;  %v869_v47 = vmul.f32 %v696_v45, %v421_v40  ;;  %1784 = vperm.xlu1 %3749, %v1658_v41   ;;  %1779 = vperm.xlu0 %3748, %v1657_v42   ;;  %v394_v39 = vld [vmem:[%s4888_s1 + $0x48] sm:$0xff]  ;;  %v393_v40 = vld [vmem:[%s4888_s1 + $0x40] sm:$0xff] }
  0xfe   : > { %3350 = vmatpush3.bf16.msra.mxu0 %v899_v43  ;;  %v2566_v41 = vld [vmem:[%s4535_s22 + $0x28] sm:$0xff]  ;;  %v2565_v42 = vld [vmem:[%s4535_s22 + $0x20] sm:$0xff] }
  0xff   : > { %v915_v52 = vpack.c.bf16 %v870_v46, %v869_v47 }
 0x100   : > { %v631_v53 = vpop.permute.xlu1 %630  ;;  %v626_v54 = vpop.permute.xlu0 %625 }
 0x101   : > { %v856_v55 = vmul.f32 %v631_v53, %v408_v48  ;;  %v855_v56 = vmul.f32 %v626_v54, %v407_v49  ;;  %1794 = vperm.xlu1 %3749, %v1660_v50   ;;  %1789 = vperm.xlu0 %3748, %v1659_v51   ;;  %v426_v48 = vld [vmem:[%s4888_s1 + $0x148] sm:$0xff]  ;;  %v425_v49 = vld [vmem:[%s4888_s1 + $0x140] sm:$0xff]  ;;  %v2568_v50 = vld [vmem:[%s4535_s22 + $0x38] sm:$0xff] }
 0x102   : > { %3462 = vmatpush3.bf16.msra.mxu1 %v915_v52  ;;  %v2567_v51 = vld [vmem:[%s4535_s22 + $0x30] sm:$0xff] }
 0x103   : > { %v908_v61 = vpack.c.bf16 %v856_v55, %v855_v56 }
 0x104   : > { %v791_v62 = vpop.permute.xlu1 %790  ;;  %v786_v63 = vpop.permute.xlu0 %785 }
 0x105   : > { %v888_v1 = vmul.f32 %v791_v62, %v440_v57  ;;  %v887_v2 = vmul.f32 %v786_v63, %v439_v58  ;;  %1804 = vperm.xlu1 %3749, %v1662_v59   ;;  %1799 = vperm.xlu0 %3748, %v1661_v60   ;;  %v412_v57 = vld [vmem:[%s4888_s1 + $0xd8] sm:$0xff]  ;;  %v411_v58 = vld [vmem:[%s4888_s1 + $0xd0] sm:$0xff]  ;;  %v2570_v59 = vld [vmem:[%s4535_s22 + $0x48] sm:$0xff] }
 0x106   : > { %3351 = vmatprep.subr.bf16.mxu0 %v908_v61  ;;  %v2569_v60 = vld [vmem:[%s4535_s22 + $0x40] sm:$0xff] }
 0x107   : > { %v924_v7 = vpack.c.bf16 %v888_v1, %v887_v2 }
 0x108   : > { %v551_v8 = vpop.permute.xlu1 %550  ;;  %v546_v9 = vpop.permute.xlu0 %545 }
 0x109   : > { %v840_v10 = vmul.f32 %v551_v8, %v392_v3  ;;  %v839_v11 = vmul.f32 %v546_v9, %v391_v4  ;;  %1814 = vperm.xlu1 %3749, %v1664_v5   ;;  %1809 = vperm.xlu0 %3748, %v1663_v6   ;;  %v444_v3 = vld [vmem:[%s4888_s1 + $0x1d8] sm:$0xff]  ;;  %v443_v4 = vld [vmem:[%s4888_s1 + $0x1d0] sm:$0xff] }
 0x10a   : > { %3463 = vmatprep.subr.bf16.mxu1 %v924_v7  ;;  %v2572_v5 = vld [vmem:[%s4535_s22 + $0x58] sm:$0xff]  ;;  %v2571_v6 = vld [vmem:[%s4535_s22 + $0x50] sm:$0xff] }
 0x10b   : > { %v900_v16 = vpack.c.bf16 %v840_v10, %v839_v11 }
 0x10c   : > { %v711_v17 = vpop.permute.xlu1 %710  ;;  %v706_v18 = vpop.permute.xlu0 %705 }
 0x10d   : > { %v872_v19 = vmul.f32 %v711_v17, %v424_v12  ;;  %v871_v20 = vmul.f32 %v706_v18, %v423_v13  ;;  %1824 = vperm.xlu1 %3749, %v1666_v14   ;;  %1819 = vperm.xlu0 %3748, %v1665_v15   ;;  %v396_v12 = vld [vmem:[%s4888_s1 + $0x58] sm:$0xff]  ;;  %v395_v13 = vld [vmem:[%s4888_s1 + $0x50] sm:$0xff]  ;;  %v2574_v14 = vld [vmem:[%s4535_s22 + $0x68] sm:$0xff] }
 0x10e   : > { %3352 = vmatpush3.bf16.msra.mxu0 %v900_v16  ;;  %v2573_v15 = vld [vmem:[%s4535_s22 + $0x60] sm:$0xff] }
 0x10f   : > { %v916_v25 = vpack.c.bf16 %v872_v19, %v871_v20 }
 0x110   : > { %v641_v26 = vpop.permute.xlu1 %640  ;;  %v636_v27 = vpop.permute.xlu0 %635 }
 0x111   : > { %v858_v28 = vmul.f32 %v641_v26, %v410_v21  ;;  %v857_v29 = vmul.f32 %v636_v27, %v409_v22  ;;  %2600 = vperm.xlu1 %3749, %v2562_v23   ;;  %2595 = vperm.xlu0 %3748, %v2561_v24   ;;  %v428_v21 = vld [vmem:[%s4888_s1 + $0x158] sm:$0xff]  ;;  %v427_v22 = vld [vmem:[%s4888_s1 + $0x150] sm:$0xff] }
 0x112   : > { %3464 = vmatpush3.bf16.msra.mxu1 %v916_v25  ;;  %v2576_v23 = vld [vmem:[%s4535_s22 + $0x78] sm:$0xff]  ;;  %v2575_v24 = vld [vmem:[%s4535_s22 + $0x70] sm:$0xff] }
 0x113   : > { %v909_v34 = vpack.c.bf16 %v858_v28, %v857_v29 }
 0x114   : > { %v801_v35 = vpop.permute.xlu1 %800  ;;  %v796_v36 = vpop.permute.xlu0 %795 }
 0x115   : > { %v890_v37 = vmul.f32 %v801_v35, %v442_v30  ;;  %v889_v38 = vmul.f32 %v796_v36, %v441_v31  ;;  %2610 = vperm.xlu1 %3749, %v2564_v32   ;;  %2605 = vperm.xlu0 %3748, %v2563_v33   ;;  %v414_v30 = vld [vmem:[%s4888_s1 + $0xe8] sm:$0xff]  ;;  %v413_v31 = vld [vmem:[%s4888_s1 + $0xe0] sm:$0xff] }
 0x116   : > { %3353 = vmatprep.subr.bf16.mxu0 %v909_v34  ;;  %v2578_v32 = vld [vmem:[%s4535_s22 + $0x88] sm:$0xff]  ;;  %v2577_v33 = vld [vmem:[%s4535_s22 + $0x80] sm:$0xff] }
 0x117   : > { %v925_v43 = vpack.c.bf16 %v890_v37, %v889_v38 }
 0x118   : > { %v561_v44 = vpop.permute.xlu1 %560  ;;  %v556_v45 = vpop.permute.xlu0 %555 }
 0x119   : > { %v842_v46 = vmul.f32 %v561_v44, %v394_v39  ;;  %v841_v47 = vmul.f32 %v556_v45, %v393_v40  ;;  %2620 = vperm.xlu1 %3749, %v2566_v41   ;;  %2615 = vperm.xlu0 %3748, %v2565_v42   ;;  %v446_v39 = vld [vmem:[%s4888_s1 + $0x1e8] sm:$0xff]  ;;  %v445_v40 = vld [vmem:[%s4888_s1 + $0x1e0] sm:$0xff]  ;;  %v2580_v41 = vld [vmem:[%s4535_s22 + $0x98] sm:$0xff] }
 0x11a   : > { %3465 = vmatprep.subr.bf16.mxu1 %v925_v43  ;;  %v2579_v42 = vld [vmem:[%s4535_s22 + $0x90] sm:$0xff] }
 0x11b   : > { %v901_v52 = vpack.c.bf16 %v842_v46, %v841_v47 }
 0x11c   : > { %v721_v53 = vpop.permute.xlu1 %720  ;;  %v716_v54 = vpop.permute.xlu0 %715 }
 0x11d   : > { %v874_v55 = vmul.f32 %v721_v53, %v426_v48  ;;  %v873_v56 = vmul.f32 %v716_v54, %v425_v49  ;;  %2630 = vperm.xlu1 %3749, %v2568_v50   ;;  %2625 = vperm.xlu0 %3748, %v2567_v51   ;;  %v398_v48 = vld [vmem:[%s4888_s1 + $0x68] sm:$0xff]  ;;  %v397_v49 = vld [vmem:[%s4888_s1 + $0x60] sm:$0xff] }
 0x11e   : > { %3354 = vmatpush3.bf16.msra.mxu0 %v901_v52  ;;  %v2582_v50 = vld [vmem:[%s4535_s22 + $0xa8] sm:$0xff]  ;;  %v2581_v51 = vld [vmem:[%s4535_s22 + $0xa0] sm:$0xff] }
 0x11f   : > { %v917_v61 = vpack.c.bf16 %v874_v55, %v873_v56 }
 0x120   : > { %v651_v62 = vpop.permute.xlu1 %650  ;;  %v646_v63 = vpop.permute.xlu0 %645 }
 0x121   : > { %v860_v1 = vmul.f32 %v651_v62, %v412_v57  ;;  %v859_v2 = vmul.f32 %v646_v63, %v411_v58  ;;  %2640 = vperm.xlu1 %3749, %v2570_v59   ;;  %2635 = vperm.xlu0 %3748, %v2569_v60   ;;  %v430_v57 = vld [vmem:[%s4888_s1 + $0x168] sm:$0xff]  ;;  %v429_v58 = vld [vmem:[%s4888_s1 + $0x160] sm:$0xff]  ;;  %v2584_v59 = vld [vmem:[%s4535_s22 + $0xb8] sm:$0xff] }
 0x122   : > { %3466 = vmatpush3.bf16.msra.mxu1 %v917_v61  ;;  %v2583_v60 = vld [vmem:[%s4535_s22 + $0xb0] sm:$0xff] }
 0x123   : > { %v910_v7 = vpack.c.bf16 %v860_v1, %v859_v2 }
 0x124   : > { %v811_v8 = vpop.permute.xlu1 %810  ;;  %v806_v9 = vpop.permute.xlu0 %805 }
 0x125   : > { %v892_v10 = vmul.f32 %v811_v8, %v444_v3  ;;  %v891_v11 = vmul.f32 %v806_v9, %v443_v4  ;;  %2650 = vperm.xlu1 %3749, %v2572_v5   ;;  %2645 = vperm.xlu0 %3748, %v2571_v6   ;;  %v416_v3 = vld [vmem:[%s4888_s1 + $0xf8] sm:$0xff]  ;;  %v415_v4 = vld [vmem:[%s4888_s1 + $0xf0] sm:$0xff]  ;;  %v2586_v5 = vld [vmem:[%s4535_s22 + $0xc8] sm:$0xff] }
 0x126   : > { %3355 = vmatprep.subr.bf16.mxu0 %v910_v7  ;;  %v2585_v6 = vld [vmem:[%s4535_s22 + $0xc0] sm:$0xff] }
 0x127   : > { %v926_v16 = vpack.c.bf16 %v892_v10, %v891_v11 }
 0x128   : > { %v571_v17 = vpop.permute.xlu1 %570  ;;  %v566_v18 = vpop.permute.xlu0 %565 }
 0x129   : > { %v844_v19 = vmul.f32 %v571_v17, %v396_v12  ;;  %v843_v20 = vmul.f32 %v566_v18, %v395_v13  ;;  %2660 = vperm.xlu1 %3749, %v2574_v14   ;;  %2655 = vperm.xlu0 %3748, %v2573_v15   ;;  %v448_v12 = vld [vmem:[%s4888_s1 + $0x1f8] sm:$0xff]  ;;  %v447_v13 = vld [vmem:[%s4888_s1 + $0x1f0] sm:$0xff] }
 0x12a   : > { %3467 = vmatprep.subr.bf16.mxu1 %v926_v16  ;;  %v2588_v14 = vld [vmem:[%s4535_s22 + $0xd8] sm:$0xff]  ;;  %v2587_v15 = vld [vmem:[%s4535_s22 + $0xd0] sm:$0xff] }
 0x12b   : > { %v902_v25 = vpack.c.bf16 %v844_v19, %v843_v20 }
 0x12c   : > { %v731_v26 = vpop.permute.xlu1 %730  ;;  %v726_v27 = vpop.permute.xlu0 %725 }
 0x12d   : > { %v876_v28 = vmul.f32 %v731_v26, %v428_v21  ;;  %v875_v29 = vmul.f32 %v726_v27, %v427_v22  ;;  %2670 = vperm.xlu1 %3749, %v2576_v23   ;;  %2665 = vperm.xlu0 %3748, %v2575_v24   ;;  %v400_v21 = vld [vmem:[%s4888_s1 + $0x78] sm:$0xff]  ;;  %v399_v22 = vld [vmem:[%s4888_s1 + $0x70] sm:$0xff]  ;;  %v2590_v23 = vld [vmem:[%s4535_s22 + $0xe8] sm:$0xff] }
 0x12e   : > { %3356 = vmatpush3.bf16.msra.mxu0 %v902_v25  ;;  %v2589_v24 = vld [vmem:[%s4535_s22 + $0xe0] sm:$0xff] }
 0x12f   : > { %v918_v34 = vpack.c.bf16 %v876_v28, %v875_v29 }
 0x130   : > { %v661_v35 = vpop.permute.xlu1 %660  ;;  %v656_v36 = vpop.permute.xlu0 %655 }
 0x131   : > { %v862_v37 = vmul.f32 %v661_v35, %v414_v30  ;;  %v861_v38 = vmul.f32 %v656_v36, %v413_v31  ;;  %2680 = vperm.xlu1 %3749, %v2578_v32   ;;  %2675 = vperm.xlu0 %3748, %v2577_v33   ;;  %v432_v30 = vld [vmem:[%s4888_s1 + $0x178] sm:$0xff]  ;;  %v431_v31 = vld [vmem:[%s4888_s1 + $0x170] sm:$0xff]  ;;  %v3827_v35 = vld [vmem:[#allocation2 + $0x4] ss:$8 sps:$4 sm:$0xff]  }
 0x132   : > { %3468 = vmatpush3.bf16.msra.mxu1 %v918_v34  ;;  %v2592_v32 = vld [vmem:[%s4535_s22 + $0xf8] sm:$0xff]  ;;  %v2591_v33 = vld [vmem:[%s4535_s22 + $0xf0] sm:$0xff] }
 0x133   : > { %v911_v43 = vpack.c.bf16 %v862_v37, %v861_v38 }
 0x134   : > { %v821_v44 = vpop.permute.xlu1 %820  ;;  %v816_v45 = vpop.permute.xlu0 %815 }
 0x135   : > { %v894_v46 = vmul.f32 %v821_v44, %v446_v39  ;;  %v893_v47 = vmul.f32 %v816_v45, %v445_v40  ;;  %2690 = vperm.xlu1 %3749, %v2580_v41   ;;  %2685 = vperm.xlu0 %3748, %v2579_v42   ;;  %v3750_v40 = vld [vmem:[%s4252_s29] ss:$16 sps:$4 sm:$0xff]   ;;  %v3756_v41 = vld [vmem:[%s4252_s29 + $0x24] ss:$16 sps:$4 sm:$0xff]   ;;  %v3753_v45 = vld [vmem:[%s4252_s29 + $0x8] ss:$16 sps:$4 sm:$0xff]  }
 0x136   : > { %3357 = vmatprep.subr.bf16.mxu0 %v911_v43  ;;  %v3825_v42 = vld [vmem:[#allocation2] ss:$8 sps:$4 sm:$0xff]   ;;  %v3842_v44 = vld [vmem:[#allocation2 + $0x14] ss:$8 sps:$4 sm:$0xff]  }
 0x137   : > { %v927_v52 = vpack.c.bf16 %v894_v46, %v893_v47  ;;  %v3759_v46 = vld [vmem:[%s4252_s29 + $0x2c] ss:$16 sps:$4 sm:$0xff]   ;;  %v3840_v47 = vld [vmem:[#allocation2 + $0x10] ss:$8 sps:$4 sm:$0xff]  }
 0x138   : > { %v581_v53 = vpop.permute.xlu1 %580  ;;  %v576_v54 = vpop.permute.xlu0 %575 }
 0x139   : > { %v846_v55 = vmul.f32 %v581_v53, %v398_v48  ;;  %v845_v56 = vmul.f32 %v576_v54, %v397_v49  ;;  %2700 = vperm.xlu1 %3749, %v2582_v50   ;;  %2695 = vperm.xlu0 %3748, %v2581_v51   ;;  %v3854_v48 = vld [vmem:[#allocation2 + $0x24] ss:$8 sps:$4 sm:$0xff]   ;;  %v3758_v49 = vld [vmem:[%s4252_s29 + $0x20] ss:$16 sps:$4 sm:$0xff]   ;;  %v3761_v53 = vld [vmem:[%s4252_s29 + $0x28] ss:$16 sps:$4 sm:$0xff]  }
 0x13a   : > { %3469 = vmatprep.subr.bf16.mxu1 %v927_v52  ;;  %v3762_v50 = vld [vmem:[%s4252_s29 + $0x44] ss:$16 sps:$4 sm:$0xff]   ;;  %v3852_v51 = vld [vmem:[#allocation2 + $0x20] ss:$8 sps:$4 sm:$0xff]   ;;  %v3765_v54 = vld [vmem:[%s4252_s29 + $0x4c] ss:$16 sps:$4 sm:$0xff]  }
 0x13b   : > { %v903_v61 = vpack.c.bf16 %v846_v55, %v845_v56  ;;  %v3857_v52 = vld [vmem:[#allocation2 + $0x34] ss:$8 sps:$4 sm:$0xff]   ;;  %v3855_v55 = vld [vmem:[#allocation2 + $0x30] ss:$8 sps:$4 sm:$0xff]   ;;  %v3860_v56 = vld [vmem:[#allocation2 + $0x44] ss:$8 sps:$4 sm:$0xff]  }
 0x13c   : > { %v741_v62 = vpop.permute.xlu1 %740  ;;  %v736_v63 = vpop.permute.xlu0 %735 }
 0x13d   : > { %v878_v1 = vmul.f32 %v741_v62, %v430_v57  ;;  %v877_v2 = vmul.f32 %v736_v63, %v429_v58  ;;  %2710 = vperm.xlu1 %3749, %v2584_v59   ;;  %2705 = vperm.xlu0 %3748, %v2583_v60   ;;  %v3764_v57 = vld [vmem:[%s4252_s29 + $0x40] ss:$16 sps:$4 sm:$0xff]   ;;  %v3768_v58 = vld [vmem:[%s4252_s29 + $0x64] ss:$16 sps:$4 sm:$0xff]   ;;  %v3771_v62 = vld [vmem:[%s4252_s29 + $0x6c] ss:$16 sps:$4 sm:$0xff]  }
 0x13e   : > { %3358 = vmatpush3.bf16.msra.mxu0 %v903_v61  ;;  %v3858_v59 = vld [vmem:[#allocation2 + $0x40] ss:$8 sps:$4 sm:$0xff]   ;;  %v3863_v60 = vld [vmem:[#allocation2 + $0x54] ss:$8 sps:$4 sm:$0xff]   ;;  %v3861_v63 = vld [vmem:[#allocation2 + $0x50] ss:$8 sps:$4 sm:$0xff]  }
 0x13f   : > { %v919_v7 = vpack.c.bf16 %v878_v1, %v877_v2  ;;  %v3767_v61 = vld [vmem:[%s4252_s29 + $0x48] ss:$16 sps:$4 sm:$0xff]   ;;  %v3866_v1 = vld [vmem:[#allocation2 + $0x64] ss:$8 sps:$4 sm:$0xff]   ;;  %v3770_v2 = vld [vmem:[%s4252_s29 + $0x60] ss:$16 sps:$4 sm:$0xff]  }
 0x140   : > { %v671_v8 = vpop.permute.xlu1 %670  ;;  %v666_v9 = vpop.permute.xlu0 %665 }
 0x141   : > { %v864_v10 = vmul.f32 %v671_v8, %v416_v3  ;;  %v863_v11 = vmul.f32 %v666_v9, %v415_v4  ;;  %2720 = vperm.xlu1 %3749, %v2586_v5   ;;  %2715 = vperm.xlu0 %3748, %v2585_v6   ;;  %v3774_v3 = vld [vmem:[%s4252_s29 + $0x84] ss:$16 sps:$4 sm:$0xff]   ;;  %v3864_v4 = vld [vmem:[#allocation2 + $0x60] ss:$8 sps:$4 sm:$0xff]   ;;  %v3867_v8 = vld [vmem:[#allocation2 + $0x70] ss:$8 sps:$4 sm:$0xff]  }
 0x142   : > { %3470 = vmatpush3.bf16.msra.mxu1 %v919_v7  ;;  %v3869_v5 = vld [vmem:[#allocation2 + $0x74] ss:$8 sps:$4 sm:$0xff]   ;;  %v3773_v6 = vld [vmem:[%s4252_s29 + $0x68] ss:$16 sps:$4 sm:$0xff]   ;;  %v3776_v9 = vld [vmem:[%s4252_s29 + $0x80] ss:$16 sps:$4 sm:$0xff]  }
 0x143   : > { %v912_v16 = vpack.c.bf16 %v864_v10, %v863_v11  ;;  %v3777_v7 = vld [vmem:[%s4252_s29 + $0x8c] ss:$16 sps:$4 sm:$0xff]   ;;  %v3780_v10 = vld [vmem:[%s4252_s29 + $0xa4] ss:$16 sps:$4 sm:$0xff]   ;;  %v3779_v11 = vld [vmem:[%s4252_s29 + $0x88] ss:$16 sps:$4 sm:$0xff]  }
 0x144   : > { %v831_v17 = vpop.permute.xlu1 %830  ;;  %v826_v18 = vpop.permute.xlu0 %825 }
 0x145   : > { %v896_v19 = vmul.f32 %v831_v17, %v448_v12  ;;  %v895_v20 = vmul.f32 %v826_v18, %v447_v13  ;;  %2730 = vperm.xlu1 %3749, %v2588_v14   ;;  %2725 = vperm.xlu0 %3748, %v2587_v15   ;;  %v3783_v12 = vld [vmem:[%s4252_s29 + $0xac] ss:$16 sps:$4 sm:$0xff]   ;;  %v3782_v13 = vld [vmem:[%s4252_s29 + $0xa0] ss:$16 sps:$4 sm:$0xff]   ;;  %v3786_v14 = vld [vmem:[%s4252_s29 + $0xc4] ss:$16 sps:$4 sm:$0xff]  }
 0x146   : > { %3359 = vmatprep.subr.bf16.mxu0 %v912_v16  ;;  %v3785_v15 = vld [vmem:[%s4252_s29 + $0xa8] ss:$16 sps:$4 sm:$0xff]   ;;  %v3789_v16 = vld [vmem:[%s4252_s29 + $0xcc] ss:$16 sps:$4 sm:$0xff]   ;;  %v3788_v17 = vld [vmem:[%s4252_s29 + $0xc0] ss:$16 sps:$4 sm:$0xff]  }
 0x147   : > { %v928_v25 = vpack.c.bf16 %v896_v19, %v895_v20  ;;  %v3792_v18 = vld [vmem:[%s4252_s29 + $0xe4] ss:$16 sps:$4 sm:$0xff]   ;;  %v3791_v19 = vld [vmem:[%s4252_s29 + $0xc8] ss:$16 sps:$4 sm:$0xff]   ;;  %v3795_v20 = vld [vmem:[%s4252_s29 + $0xec] ss:$16 sps:$4 sm:$0xff]  }
 0x148   : > { %v591_v26 = vpop.permute.xlu1 %590  ;;  %v586_v27 = vpop.permute.xlu0 %585 }
 0x149   : > { %v848_v28 = vmul.f32 %v591_v26, %v400_v21  ;;  %v847_v29 = vmul.f32 %v586_v27, %v399_v22  ;;  %2740 = vperm.xlu1 %3749, %v2590_v23   ;;  %2735 = vperm.xlu0 %3748, %v2589_v24   ;;  %v3794_v21 = vld [vmem:[%s4252_s29 + $0xe0] ss:$16 sps:$4 sm:$0xff]   ;;  %v3798_v22 = vld [vmem:[%s4252_s29 + $0x104] ss:$16 sps:$4 sm:$0xff]   ;;  %v3797_v23 = vld [vmem:[%s4252_s29 + $0xe8] ss:$16 sps:$4 sm:$0xff]  }
 0x14a   : > { %3471 = vmatprep.subr.bf16.mxu1 %v928_v25  ;;  %v3801_v24 = vld [vmem:[%s4252_s29 + $0x10c] ss:$16 sps:$4 sm:$0xff]   ;;  %v3800_v25 = vld [vmem:[%s4252_s29 + $0x100] ss:$16 sps:$4 sm:$0xff]   ;;  %v3804_v26 = vld [vmem:[%s4252_s29 + $0x124] ss:$16 sps:$4 sm:$0xff]  }
 0x14b   : > { %v904_v34 = vpack.c.bf16 %v848_v28, %v847_v29  ;;  %v3803_v27 = vld [vmem:[%s4252_s29 + $0x108] ss:$16 sps:$4 sm:$0xff]   ;;  %v3807_v28 = vld [vmem:[%s4252_s29 + $0x12c] ss:$16 sps:$4 sm:$0xff]   ;;  %v3806_v29 = vld [vmem:[%s4252_s29 + $0x120] ss:$16 sps:$4 sm:$0xff]  }
 0x14c   : > { %v751_v36 = vpop.permute.xlu1 %750  ;;  %v746_v37 = vpop.permute.xlu0 %745 }
 0x14d   : > { %v880_v38 = vmul.f32 %v751_v36, %v432_v30  ;;  %v879_v39 = vmul.f32 %v746_v37, %v431_v31  ;;  %2750 = vperm.xlu1 %3749, %v2592_v32   ;;  %2745 = vperm.xlu0 %3748, %v2591_v33   ;;  %v3810_v30 = vld [vmem:[%s4252_s29 + $0x144] ss:$16 sps:$4 sm:$0xff]   ;;  %v3809_v31 = vld [vmem:[%s4252_s29 + $0x128] ss:$16 sps:$4 sm:$0xff]   ;;  %v3813_v32 = vld [vmem:[%s4252_s29 + $0x14c] ss:$16 sps:$4 sm:$0xff]  }
 0x14e   : > { %3360 = vmatpush3.bf16.msra.mxu0 %v904_v34  ;;  %v3812_v33 = vld [vmem:[%s4252_s29 + $0x140] ss:$16 sps:$4 sm:$0xff]   ;;  %v3816_v34 = vld [vmem:[%s4252_s29 + $0x164] ss:$16 sps:$4 sm:$0xff]   ;;  %v3819_v36 = vld [vmem:[%s4252_s29 + $0x16c] ss:$16 sps:$4 sm:$0xff]  }
 0x14f   : > { %v920_v43 = vpack.c.bf16 %v880_v38, %v879_v39  ;;  %1983 = vmatprep.subr.bf16.mxu0 %v3827_v35  ;;  %v3815_v35 = vld [vmem:[%s4252_s29 + $0x148] ss:$16 sps:$4 sm:$0xff]   ;;  %v3818_v37 = vld [vmem:[%s4252_s29 + $0x160] ss:$16 sps:$4 sm:$0xff]   ;;  %v3822_v38 = vld [vmem:[%s4252_s29 + $0x184] ss:$16 sps:$4 sm:$0xff]  }
 0x150   : > { %v3821_v39 = vld [vmem:[%s4252_s29 + $0x168] ss:$16 sps:$4 sm:$0xff]  }
 0x151   : > { %1346 = vmatmul.mubr.bf16.vlgmr.msra.gmra.mrb[0].mxu0 %v3750_v40  ;;  %3472 = vmatpush3.bf16.msra.mxu1 %v920_v43  ;;  %v3828_v40 = vld [vmem:[%s4252_s29 + $0x18c] ss:$16 sps:$4 sm:$0xff]   ;;  %v3830_v43 = vld [vmem:[%s4252_s29 + $0x188] ss:$16 sps:$4 sm:$0xff]  }
 0x152   : > { %1353 = vmatprep.mubr.bf16.mxu0 %v3756_v41  ;;  %1984 = vmatpush1.bf16.msra.mxu0 %v3825_v42  ;;  %v3824_v41 = vld [vmem:[%s4252_s29 + $0x180] ss:$16 sps:$4 sm:$0xff]   ;;  %v3831_v42 = vld [vmem:[%s4252_s29 + $0x1a4] ss:$16 sps:$4 sm:$0xff]  }
 0x153   : > { %1985 = vmatprep.subr.bf16.mxu0 %v3842_v44  ;;  %v3834_v44 = vld [vmem:[%s4252_s29 + $0x1ac] ss:$16 sps:$4 sm:$0xff]  }
 0x154   : > { %1507 = vmatmul.mubr.bf16.vlgmr.msra.gmra.mrb[0].mxu1 %v3753_v45  ;;  %v3833_v45 = vld [vmem:[%s4252_s29 + $0x1a0] ss:$16 sps:$4 sm:$0xff]  }
 0x155   : > { %1514 = vmatprep.mubr.bf16.mxu1 %v3759_v46  ;;  %v3837_v46 = vld [vmem:[%s4252_s29 + $0x1c4] ss:$16 sps:$4 sm:$0xff]  }
 0x156   : > { %1986 = vmatpush1.bf16.msra.mxu0 %v3840_v47  ;;  %v3836_v47 = vld [vmem:[%s4252_s29 + $0x1a8] ss:$16 sps:$4 sm:$0xff]  }
 0x157   : > { %1987 = vmatprep.subr.bf16.mxu0 %v3854_v48  ;;  %v3843_v48 = vld [vmem:[%s4252_s29 + $0x1cc] ss:$16 sps:$4 sm:$0xff]  }
 0x159   : > { %1354 = vmatmul.mubr.bf16.gmra.mrb[4].mxu0 %v3758_v49  ;;  %v3839_v49 = vld [vmem:[%s4252_s29 + $0x1c0] ss:$16 sps:$4 sm:$0xff]  }
 0x15a   : > { %1361 = vmatprep.mubr.bf16.mxu0 %v3762_v50  ;;  %1988 = vmatpush1.bf16.msra.mxu0 %v3852_v51  ;;  %v3846_v50 = vld [vmem:[%s4252_s29 + $0x1e4] ss:$16 sps:$4 sm:$0xff]   ;;  %v3845_v51 = vld [vmem:[%s4252_s29 + $0x1c8] ss:$16 sps:$4 sm:$0xff]  }
 0x15b   : > { %1989 = vmatprep.subr.bf16.mxu0 %v3857_v52  ;;  %v3849_v52 = vld [vmem:[%s4252_s29 + $0x1ec] ss:$16 sps:$4 sm:$0xff]  }
 0x15c   : > { %1515 = vmatmul.mubr.bf16.gmra.mrb[4].mxu1 %v3761_v53  ;;  %v3848_v53 = vld [vmem:[%s4252_s29 + $0x1e0] ss:$16 sps:$4 sm:$0xff]  }
 0x15d   : > { %1522 = vmatprep.mubr.bf16.mxu1 %v3765_v54  ;;  %v3851_v54 = vld [vmem:[%s4252_s29 + $0x1e8] ss:$16 sps:$4 sm:$0xff]  }
 0x15e   : > { %1990 = vmatpush1.bf16.msra.mxu0 %v3855_v55  ;;  %v3870_v55 = vld [vmem:[#allocation5 + $0x40] sm:$0xff]  }
 0x15f   : > { %1991 = vmatprep.subr.bf16.mxu0 %v3860_v56  ;;  %v3871_v56 = vld [vmem:[#allocation5] sm:$0xff]   ;;  %3569 = vmatprep.subr.bf16.mxu1 %v3870_v55 }
 0x160   : > { %3570 = vmatpush3.bf16.msra.mxu1 %v3871_v56 }
 0x161   : > { %1362 = vmatmul.mubr.bf16.gmra.mrb[8].mxu0 %v3764_v57 }
 0x162   : > { %1369 = vmatprep.mubr.bf16.mxu0 %v3768_v58  ;;  %1992 = vmatpush1.bf16.msra.mxu0 %v3858_v59  ;;  %v3872_v59 = vld [vmem:[#allocation5 + $0x48] sm:$0xff]  }
 0x163   : > { %1993 = vmatprep.subr.bf16.mxu0 %v3863_v60  ;;  %v3873_v60 = vld [vmem:[#allocation5 + $0x8] sm:$0xff]   ;;  %3571 = vmatprep.subr.bf16.mxu1 %v3872_v59 }
 0x164   : > { %1523 = vmatmul.mubr.bf16.gmra.mrb[8].mxu1 %v3767_v61 }
 0x165   : > { %1530 = vmatprep.mubr.bf16.mxu1 %v3771_v62  ;;  %3572 = vmatpush3.bf16.msra.mxu1 %v3873_v60 }
 0x166   : > { %1994 = vmatpush1.bf16.msra.mxu0 %v3861_v63 }
 0x167   : > { %1995 = vmatprep.subr.bf16.mxu0 %v3866_v1 }
 0x169   : > { %1370 = vmatmul.mubr.bf16.gmra.mrb[12].mxu0 %v3770_v2 }
 0x16a   : > { %1377 = vmatprep.mubr.bf16.mxu0 %v3774_v3  ;;  %1996 = vmatpush1.bf16.msra.mxu0 %v3864_v4 }
 0x16b   : > { %1997 = vmatprep.subr.bf16.mxu0 %v3869_v5 }
 0x16c   : > { %1531 = vmatmul.mubr.bf16.gmra.mrb[12].mxu1 %v3773_v6 }
 0x16d   : > { %1538 = vmatprep.mubr.bf16.mxu1 %v3777_v7 }
 0x16e   : > { %1998 = vmatpush1.bf16.msra.mxu0 %v3867_v8 }
 0x171   : > { %1378 = vmatmul.mubr.bf16.gmra.mrb[16].mxu0 %v3776_v9  ;;  %v3874_v9 = vld [vmem:[#allocation5 + $0x50] sm:$0xff]  }
 0x172   : > { %1385 = vmatprep.mubr.bf16.mxu0 %v3780_v10  ;;  %v3875_v10 = vld [vmem:[#allocation5 + $0x10] sm:$0xff]   ;;  %3573 = vmatprep.subr.bf16.mxu1 %v3874_v9 }
 0x173   : > { %3574 = vmatpush3.bf16.msra.mxu1 %v3875_v10 }
 0x174   : > { %1539 = vmatmul.mubr.bf16.gmra.mrb[16].mxu1 %v3779_v11  ;;  %v3876_v11 = vld [vmem:[#allocation5 + $0x58] sm:$0xff]  }
 0x175   : > { %1546 = vmatprep.mubr.bf16.mxu1 %v3783_v12  ;;  %3575 = vmatprep.subr.bf16.mxu1 %v3876_v11 }
 0x179   : > { %1386 = vmatmul.mubr.bf16.gmra.mrb[20].mxu0 %v3782_v13  ;;  %v1675_v13 = vpop.permute.xlu1 %1674 }
 0x17a   : > { %1393 = vmatprep.mubr.bf16.mxu0 %v3786_v14 }
 0x17c   : > { %1547 = vmatmul.mubr.bf16.gmra.mrb[20].mxu1 %v3785_v15 }
 0x17d   : > { %1554 = vmatprep.mubr.bf16.mxu1 %v3789_v16  ;;  %v1670_v16 = vpop.permute.xlu0 %1669 }
 0x181   : > { %1394 = vmatmul.mubr.bf16.gmra.mrb[24].mxu0 %v3788_v17 }
 0x182   : > { %1401 = vmatprep.mubr.bf16.mxu0 %v3792_v18 }
 0x184   : > { %1555 = vmatmul.mubr.bf16.gmra.mrb[24].mxu1 %v3791_v19  ;;  %v3877_v19 = vld [vmem:[#allocation5 + $0x18] sm:$0xff]  }
 0x185   : > { %1562 = vmatprep.mubr.bf16.mxu1 %v3795_v20  ;;  %3576 = vmatpush3.bf16.msra.mxu1 %v3877_v19 }
 0x189   : > { %1402 = vmatmul.mubr.bf16.gmra.mrb[28].mxu0 %v3794_v21 }
 0x18a   : > { %1409 = vmatprep.mubr.bf16.mxu0 %v3798_v22 }
 0x18c   : > { %1563 = vmatmul.mubr.bf16.gmra.mrb[28].mxu1 %v3797_v23 }
 0x18d   : > { %1570 = vmatprep.mubr.bf16.mxu1 %v3801_v24  ;;  %v3878_v24 = vld [vmem:[#allocation5 + $0x60] sm:$0xff]  }
 0x18e   : > { %3577 = vmatprep.subr.bf16.mxu1 %v3878_v24 }
 0x191   : > { %1410 = vmatmul.mubr.bf16.gmra.mrb[32].mxu0 %v3800_v25 }
 0x192   : > { %1417 = vmatprep.mubr.bf16.mxu0 %v3804_v26 }
 0x194   : > { %1571 = vmatmul.mubr.bf16.gmra.mrb[32].mxu1 %v3803_v27 }
 0x195   : > { %1578 = vmatprep.mubr.bf16.mxu1 %v3807_v28 }
 0x199   : > { %1418 = vmatmul.mubr.bf16.gmra.mrb[36].mxu0 %v3806_v29 }
 0x19a   : > { %1425 = vmatprep.mubr.bf16.mxu0 %v3810_v30 }
 0x19c   : > { %1579 = vmatmul.mubr.bf16.gmra.mrb[36].mxu1 %v3809_v31  ;;  %v3879_v31 = vld [vmem:[#allocation5 + $0x20] sm:$0xff]  }
 0x19d   : > { %1586 = vmatprep.mubr.bf16.mxu1 %v3813_v32  ;;  %3578 = vmatpush3.bf16.msra.mxu1 %v3879_v31 }
 0x1a1   : > { %1426 = vmatmul.mubr.bf16.gmra.mrb[40].mxu0 %v3812_v33 }
 0x1a2   : > { %1433 = vmatprep.mubr.bf16.mxu0 %v3816_v34  ;;  %v3880_v34 = vld [vmem:[#allocation5 + $0x68] sm:$0xff]  }
 0x1a3   : > { %3579 = vmatprep.subr.bf16.mxu1 %v3880_v34 }
 0x1a4   : > { %1587 = vmatmul.mubr.bf16.gmra.mrb[40].mxu1 %v3815_v35 }
 0x1a5   : > { %1594 = vmatprep.mubr.bf16.mxu1 %v3819_v36  ;;  %v1685_v36 = vpop.permute.xlu1 %1684 }
 0x1a9   : > { %1434 = vmatmul.mubr.bf16.gmra.mrb[44].mxu0 %v3818_v37  ;;  %v1695_v59 = vpop.permute.xlu1 %1694 }
 0x1aa   : > { %1441 = vmatprep.mubr.bf16.mxu0 %v3822_v38 }
 0x1ac   : > { %1595 = vmatmul.mubr.bf16.gmra.mrb[44].mxu1 %v3821_v39  ;;  %v1680_v39 = vpop.permute.xlu0 %1679 }
 0x1ad   : > { %1602 = vmatprep.mubr.bf16.mxu1 %v3828_v40 }
 0x1b1   : > { %1442 = vmatmul.mubr.bf16.gmra.mrb[48].mxu0 %v3824_v41 }
 0x1b2   : > { %1449 = vmatprep.mubr.bf16.mxu0 %v3831_v42  ;;  %v3881_v42 = vld [vmem:[#allocation5 + $0x28] sm:$0xff]  }
 0x1b3   : > { %3580 = vmatpush3.bf16.msra.mxu1 %v3881_v42 }
 0x1b4   : > { %1603 = vmatmul.mubr.bf16.gmra.mrb[48].mxu1 %v3830_v43 }
 0x1b5   : > { %1610 = vmatprep.mubr.bf16.mxu1 %v3834_v44 }
 0x1b9   : > { %1450 = vmatmul.mubr.bf16.gmra.mrb[52].mxu0 %v3833_v45 }
 0x1ba   : > { %1457 = vmatprep.mubr.bf16.mxu0 %v3837_v46 }
 0x1bc   : > { %1611 = vmatmul.mubr.bf16.gmra.mrb[52].mxu1 %v3836_v47  ;;  %v3882_v47 = vld [vmem:[#allocation5 + $0x70] sm:$0xff]  }
 0x1bd   : > { %1618 = vmatprep.mubr.bf16.mxu1 %v3843_v48  ;;  %3581 = vmatprep.subr.bf16.mxu1 %v3882_v47 }
 0x1c1   : > { %1458 = vmatmul.mubr.bf16.gmra.mrb[56].mxu0 %v3839_v49 }
 0x1c2   : > { %1465 = vmatprep.mubr.bf16.mxu0 %v3846_v50 }
 0x1c4   : > { %1619 = vmatmul.mubr.bf16.gmra.mrb[56].mxu1 %v3845_v51 }
 0x1c5   : > { %1626 = vmatprep.mubr.bf16.mxu1 %v3849_v52 }
 0x1c9   : > { %1466 = vmatmul.mubr.bf16.gmra.mrb[60].mxu0 %v3848_v53 }
 0x1ca   : > { %2015 = vmatprep.mubr.bf16.mxu0 %v4020_v0 }
 0x1cc   : > { %1627 = vmatmul.mubr.bf16.gmra.mrb[60].mxu1 %v3851_v54  ;;  %v3883_v54 = vld [vmem:[#allocation5 + $0x30] sm:$0xff]  }
 0x1cd   : > { %3582 = vmatpush3.bf16.msra.mxu1 %v3883_v54 }
 0x224   : > { %v3361_v57 = vpop.f32.mrb[0].mxu0 }
 0x225   : > { %v3362_v58 = vpop.f32.mrb[1].mxu0 }
 0x226   : > { %v3363_v61 = vadd.f32 %v3362_v58, %v3361_v57  ;;  %v3364_v62 = vpop.f32.mrb[2].mxu0  ;;  %v3884_v57 = vld [vmem:[#allocation5 + $0x78] sm:$0xff]  }
 0x227   : > { %v3365_v63 = vpop.f32.mrb[3].mxu0  ;;  %v3473_v1 = vpop.f32.mrb[0].mxu1  ;;  %3583 = vmatprep.subr.bf16.mxu1 %v3884_v57 }
 0x228   : > { %v3366_v2 = vadd.f32 %v3365_v63, %v3364_v62  ;;  %v3474_v3 = vpop.f32.mrb[1].mxu1  ;;  %v1690_v62 = vpop.permute.xlu0 %1689 }
 0x229   : > { %v3475_v4 = vadd.f32 %v3474_v3, %v3473_v1  ;;  %v3476_v5 = vpop.f32.mrb[2].mxu1 }
 0x22a   : > { %v3477_v6 = vpop.f32.mrb[3].mxu1 }
 0x22b   : > { %v1509_v7 = vadd.f32 %v3475_v4, %v3363_v61  ;;  %v3478_v8 = vadd.f32 %v3477_v6, %v3476_v5 }
 0x22c   : > { %v3367_v12 = vpop.f32.mrb[4].mxu0  ;;  %v1700_v19 = vpop.permute.xlu0 %1699 }
 0x22d   : > { %v1512_v14 = vadd.f32 %v3478_v8, %v3366_v2  ;;  %v3368_v15 = vpop.f32.mrb[5].mxu0  ;;  %v1827_v20 = vmul.f32 %v1670_v16, %v1509_v7  ;;  %v3885_v2 = vld [vmem:[#allocation5 + $0x38] sm:$0xff]   ;;  %v1705_v16 = vpop.permute.xlu1 %1704 }
 0x22e   : > { %v3369_v17 = vadd.f32 %v3368_v15, %v3367_v12  ;;  %v3370_v18 = vpop.f32.mrb[6].mxu0  ;;  %3584 = vmatpush3.bf16.msra.mxu1 %v3885_v2 }
 0x22f   : > { %v1828_v21 = vmul.f32 %v1675_v13, %v1512_v14  ;;  %v3371_v22 = vpop.f32.mrb[7].mxu0  ;;  %v3479_v23 = vpop.f32.mrb[4].mxu1 }
 0x230   : > { %v3372_v25 = vadd.f32 %v3371_v22, %v3370_v18  ;;  %v3480_v26 = vpop.f32.mrb[5].mxu1 }
 0x231   : > { %v1859_v27 = vpack.c.bf16 %v1828_v21, %v1827_v20  ;;  %v3481_v28 = vadd.f32 %v3480_v26, %v3479_v23  ;;  %v3482_v29 = vpop.f32.mrb[6].mxu1 }
 0x232   : > { %v3483_v30 = vpop.f32.mrb[7].mxu1 }
 0x233   : > { %v1517_v32 = vadd.f32 %v3481_v28, %v3369_v17  ;;  %v3484_v33 = vadd.f32 %v3483_v30, %v3482_v29  ;;  %2016 = vmatmul.mubr.bf16.vlgmr.msra.gmra.mrb[64].mxu0 %v1859_v27 }
 0x234   : > { %v3373_v35 = vpop.f32.mrb[8].mxu0  ;;  %2025 = vmatprep.mubr.bf16.mxu0 %v4020_v0 }
 0x235   : > { %v1520_v37 = vadd.f32 %v3484_v33, %v3372_v25  ;;  %v3374_v38 = vpop.f32.mrb[9].mxu0  ;;  %v1829_v43 = vmul.f32 %v1680_v39, %v1517_v32 }
 0x236   : > { %v3375_v40 = vadd.f32 %v3374_v38, %v3373_v35  ;;  %v3376_v41 = vpop.f32.mrb[10].mxu0  ;;  %v1715_v35 = vpop.permute.xlu1 %1714 }
 0x237   : > { %v1830_v44 = vmul.f32 %v1685_v36, %v1520_v37  ;;  %v3377_v45 = vpop.f32.mrb[11].mxu0  ;;  %v3485_v46 = vpop.f32.mrb[8].mxu1 }
 0x238   : > { %v3378_v48 = vadd.f32 %v3377_v45, %v3376_v41  ;;  %v3486_v49 = vpop.f32.mrb[9].mxu1  ;;  %v1710_v38 = vpop.permute.xlu0 %1709 }
 0x239   : > { %v3487_v50 = vadd.f32 %v3486_v49, %v3485_v46  ;;  %v3488_v51 = vpop.f32.mrb[10].mxu1  ;;  %v1860_v52 = vpack.c.bf16 %v1830_v44, %v1829_v43 }
 0x23a   : > { %v3489_v53 = vpop.f32.mrb[11].mxu1  ;;  %v1725_v54 = vpop.permute.xlu1 %1724 }
 0x23b   : > { %v1525_v55 = vadd.f32 %v3487_v50, %v3375_v40  ;;  %v3490_v56 = vadd.f32 %v3489_v53, %v3488_v51  ;;  %2026 = vmatmul.mubr.bf16.gmra.mrb[68].mxu0 %v1860_v52 }
 0x23c   : > { %v3379_v58 = vpop.f32.mrb[12].mxu0  ;;  %2035 = vmatprep.mubr.bf16.mxu0 %v4020_v0  ;;  %v1720_v57 = vpop.permute.xlu0 %1719 }
 0x23d   : > { %v1528_v60 = vadd.f32 %v3490_v56, %v3378_v48  ;;  %v3380_v61 = vpop.f32.mrb[13].mxu0  ;;  %v1831_v3 = vmul.f32 %v1690_v62, %v1525_v55 }
 0x23e   : > { %v3381_v63 = vadd.f32 %v3380_v61, %v3379_v58  ;;  %v3382_v1 = vpop.f32.mrb[14].mxu0 }
 0x23f   : > { %v1832_v4 = vmul.f32 %v1695_v59, %v1528_v60  ;;  %v3383_v5 = vpop.f32.mrb[15].mxu0  ;;  %v3491_v6 = vpop.f32.mrb[12].mxu1 }
 0x240   : > { %v3384_v7 = vadd.f32 %v3383_v5, %v3382_v1  ;;  %v3492_v8 = vpop.f32.mrb[13].mxu1 }
 0x241   : > { %v3493_v9 = vadd.f32 %v3492_v8, %v3491_v6  ;;  %v3494_v10 = vpop.f32.mrb[14].mxu1  ;;  %v1861_v11 = vpack.c.bf16 %v1832_v4, %v1831_v3 }
 0x242   : > { %v3495_v12 = vpop.f32.mrb[15].mxu1 }
 0x243   : > { %v1533_v13 = vadd.f32 %v3493_v9, %v3381_v63  ;;  %v3496_v14 = vadd.f32 %v3495_v12, %v3494_v10  ;;  %2036 = vmatmul.mubr.bf16.gmra.mrb[72].mxu0 %v1861_v11  ;;  %v1735_v10 = vpop.permute.xlu1 %1734 }
 0x244   : > { %v3385_v15 = vpop.f32.mrb[16].mxu0  ;;  %2045 = vmatprep.mubr.bf16.mxu0 %v4020_v0 }
 0x245   : > { %v1536_v17 = vadd.f32 %v3496_v14, %v3384_v7  ;;  %v3386_v18 = vpop.f32.mrb[17].mxu0  ;;  %v1833_v22 = vmul.f32 %v1700_v19, %v1533_v13  ;;  %v1730_v13 = vpop.permute.xlu0 %1729 }
 0x246   : > { %v3387_v20 = vadd.f32 %v3386_v18, %v3385_v15  ;;  %v3388_v21 = vpop.f32.mrb[18].mxu0 }
 0x247   : > { %v1834_v23 = vmul.f32 %v1705_v16, %v1536_v17  ;;  %v3389_v24 = vpop.f32.mrb[19].mxu0  ;;  %v3497_v25 = vpop.f32.mrb[16].mxu1 }
 0x248   : > { %v3390_v26 = vadd.f32 %v3389_v24, %v3388_v21  ;;  %v3498_v27 = vpop.f32.mrb[17].mxu1 }
 0x249   : > { %v3499_v28 = vadd.f32 %v3498_v27, %v3497_v25  ;;  %v3500_v29 = vpop.f32.mrb[18].mxu1  ;;  %v1862_v30 = vpack.c.bf16 %v1834_v23, %v1833_v22 }
 0x24a   : > { %v3501_v31 = vpop.f32.mrb[19].mxu1 }
 0x24b   : > { %v1541_v32 = vadd.f32 %v3499_v28, %v3387_v20  ;;  %v3502_v33 = vadd.f32 %v3501_v31, %v3500_v29  ;;  %2046 = vmatmul.mubr.bf16.gmra.mrb[76].mxu0 %v1862_v30  ;;  %v1745_v29 = vpop.permute.xlu1 %1744 }
 0x24c   : > { %v3391_v34 = vpop.f32.mrb[20].mxu0  ;;  %2055 = vmatprep.mubr.bf16.mxu0 %v4020_v0 }
 0x24d   : > { %v1544_v36 = vadd.f32 %v3502_v33, %v3390_v26  ;;  %v3392_v37 = vpop.f32.mrb[21].mxu0  ;;  %v1835_v41 = vmul.f32 %v1710_v38, %v1541_v32  ;;  %v1740_v32 = vpop.permute.xlu0 %1739 }
 0x24e   : > { %v3393_v39 = vadd.f32 %v3392_v37, %v3391_v34  ;;  %v3394_v40 = vpop.f32.mrb[22].mxu0 }
 0x24f   : > { %v1836_v42 = vmul.f32 %v1715_v35, %v1544_v36  ;;  %v3395_v43 = vpop.f32.mrb[23].mxu0  ;;  %v3503_v44 = vpop.f32.mrb[20].mxu1 }
 0x250   : > { %v3396_v45 = vadd.f32 %v3395_v43, %v3394_v40  ;;  %v3504_v46 = vpop.f32.mrb[21].mxu1 }
 0x251   : > { %v3505_v47 = vadd.f32 %v3504_v46, %v3503_v44  ;;  %v3506_v48 = vpop.f32.mrb[22].mxu1  ;;  %v1863_v49 = vpack.c.bf16 %v1836_v42, %v1835_v41 }
 0x252   : > { %v3507_v50 = vpop.f32.mrb[23].mxu1 }
 0x253   : > { %v1549_v51 = vadd.f32 %v3505_v47, %v3393_v39  ;;  %v3508_v52 = vadd.f32 %v3507_v50, %v3506_v48  ;;  %2056 = vmatmul.mubr.bf16.gmra.mrb[80].mxu0 %v1863_v49  ;;  %v1755_v48 = vpop.permute.xlu1 %1754 }
 0x254   : > { %v3397_v53 = vpop.f32.mrb[24].mxu0  ;;  %2065 = vmatprep.mubr.bf16.mxu0 %v4020_v0 }
 0x255   : > { %v1552_v55 = vadd.f32 %v3508_v52, %v3396_v45  ;;  %v3398_v56 = vpop.f32.mrb[25].mxu0  ;;  %v1837_v60 = vmul.f32 %v1720_v57, %v1549_v51  ;;  %v1750_v51 = vpop.permute.xlu0 %1749 }
 0x256   : > { %v3399_v58 = vadd.f32 %v3398_v56, %v3397_v53  ;;  %v3400_v59 = vpop.f32.mrb[26].mxu0 }
 0x257   : > { %v1838_v61 = vmul.f32 %v1725_v54, %v1552_v55  ;;  %v3401_v62 = vpop.f32.mrb[27].mxu0  ;;  %v3509_v63 = vpop.f32.mrb[24].mxu1 }
 0x258   : > { %v3402_v1 = vadd.f32 %v3401_v62, %v3400_v59  ;;  %v3510_v2 = vpop.f32.mrb[25].mxu1 }
 0x259   : > { %v3511_v3 = vadd.f32 %v3510_v2, %v3509_v63  ;;  %v3512_v4 = vpop.f32.mrb[26].mxu1  ;;  %v1864_v5 = vpack.c.bf16 %v1838_v61, %v1837_v60 }
 0x25a   : > { %v3513_v6 = vpop.f32.mrb[27].mxu1 }
 0x25b   : > { %v1557_v7 = vadd.f32 %v3511_v3, %v3399_v58  ;;  %v3514_v8 = vadd.f32 %v3513_v6, %v3512_v4  ;;  %2066 = vmatmul.mubr.bf16.gmra.mrb[84].mxu0 %v1864_v5  ;;  %v1765_v4 = vpop.permute.xlu1 %1764 }
 0x25c   : > { %v3403_v9 = vpop.f32.mrb[28].mxu0  ;;  %2075 = vmatprep.mubr.bf16.mxu0 %v4020_v0 }
 0x25d   : > { %v1560_v11 = vadd.f32 %v3514_v8, %v3402_v1  ;;  %v3404_v12 = vpop.f32.mrb[29].mxu0  ;;  %v1839_v16 = vmul.f32 %v1730_v13, %v1557_v7  ;;  %v1760_v7 = vpop.permute.xlu0 %1759 }
 0x25e   : > { %v3405_v14 = vadd.f32 %v3404_v12, %v3403_v9  ;;  %v3406_v15 = vpop.f32.mrb[30].mxu0 }
 0x25f   : > { %v1840_v17 = vmul.f32 %v1735_v10, %v1560_v11  ;;  %v3407_v18 = vpop.f32.mrb[31].mxu0  ;;  %v3515_v19 = vpop.f32.mrb[28].mxu1 }
 0x260   : > { %v3408_v20 = vadd.f32 %v3407_v18, %v3406_v15  ;;  %v3516_v21 = vpop.f32.mrb[29].mxu1 }
 0x261   : > { %v3517_v22 = vadd.f32 %v3516_v21, %v3515_v19  ;;  %v3518_v23 = vpop.f32.mrb[30].mxu1  ;;  %v1865_v24 = vpack.c.bf16 %v1840_v17, %v1839_v16 }
 0x262   : > { %v3519_v25 = vpop.f32.mrb[31].mxu1 }
 0x263   : > { %v1565_v26 = vadd.f32 %v3517_v22, %v3405_v14  ;;  %v3520_v27 = vadd.f32 %v3519_v25, %v3518_v23  ;;  %2076 = vmatmul.mubr.bf16.gmra.mrb[88].mxu0 %v1865_v24  ;;  %v1775_v23 = vpop.permute.xlu1 %1774 }
 0x264   : > { %v3409_v28 = vpop.f32.mrb[32].mxu0  ;;  %2085 = vmatprep.mubr.bf16.mxu0 %v4020_v0 }
 0x265   : > { %v1568_v30 = vadd.f32 %v3520_v27, %v3408_v20  ;;  %v3410_v31 = vpop.f32.mrb[33].mxu0  ;;  %v1841_v35 = vmul.f32 %v1740_v32, %v1565_v26  ;;  %v1770_v26 = vpop.permute.xlu0 %1769 }
 0x266   : > { %v3411_v33 = vadd.f32 %v3410_v31, %v3409_v28  ;;  %v3412_v34 = vpop.f32.mrb[34].mxu0 }
 0x267   : > { %v1842_v36 = vmul.f32 %v1745_v29, %v1568_v30  ;;  %v3413_v37 = vpop.f32.mrb[35].mxu0  ;;  %v3521_v38 = vpop.f32.mrb[32].mxu1 }
 0x268   : > { %v3414_v39 = vadd.f32 %v3413_v37, %v3412_v34  ;;  %v3522_v40 = vpop.f32.mrb[33].mxu1 }
 0x269   : > { %v3523_v41 = vadd.f32 %v3522_v40, %v3521_v38  ;;  %v3524_v42 = vpop.f32.mrb[34].mxu1  ;;  %v1866_v43 = vpack.c.bf16 %v1842_v36, %v1841_v35 }
 0x26a   : > { %v3525_v44 = vpop.f32.mrb[35].mxu1 }
 0x26b   : > { %v1573_v45 = vadd.f32 %v3523_v41, %v3411_v33  ;;  %v3526_v46 = vadd.f32 %v3525_v44, %v3524_v42  ;;  %2086 = vmatmul.mubr.bf16.gmra.mrb[92].mxu0 %v1866_v43  ;;  %v1785_v42 = vpop.permute.xlu1 %1784 }
 0x26c   : > { %v3415_v47 = vpop.f32.mrb[36].mxu0  ;;  %2095 = vmatprep.mubr.bf16.mxu0 %v4020_v0 }
 0x26d   : > { %v1576_v49 = vadd.f32 %v3526_v46, %v3414_v39  ;;  %v3416_v50 = vpop.f32.mrb[37].mxu0  ;;  %v1843_v54 = vmul.f32 %v1750_v51, %v1573_v45  ;;  %v1780_v45 = vpop.permute.xlu0 %1779 }
 0x26e   : > { %v3417_v52 = vadd.f32 %v3416_v50, %v3415_v47  ;;  %v3418_v53 = vpop.f32.mrb[38].mxu0 }
 0x26f   : > { %v1844_v55 = vmul.f32 %v1755_v48, %v1576_v49  ;;  %v3419_v56 = vpop.f32.mrb[39].mxu0  ;;  %v3527_v57 = vpop.f32.mrb[36].mxu1 }
 0x270   : > { %v3420_v58 = vadd.f32 %v3419_v56, %v3418_v53  ;;  %v3528_v59 = vpop.f32.mrb[37].mxu1 }
 0x271   : > { %v3529_v60 = vadd.f32 %v3528_v59, %v3527_v57  ;;  %v3530_v61 = vpop.f32.mrb[38].mxu1  ;;  %v1867_v62 = vpack.c.bf16 %v1844_v55, %v1843_v54 }
 0x272   : > { %v3531_v63 = vpop.f32.mrb[39].mxu1 }
 0x273   : > { %v1581_v1 = vadd.f32 %v3529_v60, %v3417_v52  ;;  %v3532_v2 = vadd.f32 %v3531_v63, %v3530_v61  ;;  %2096 = vmatmul.mubr.bf16.gmra.mrb[96].mxu0 %v1867_v62  ;;  %v1795_v61 = vpop.permute.xlu1 %1794 }
 0x274   : > { %v3421_v3 = vpop.f32.mrb[40].mxu0  ;;  %2105 = vmatprep.mubr.bf16.mxu0 %v4020_v0 }
 0x275   : > { %v1584_v5 = vadd.f32 %v3532_v2, %v3420_v58  ;;  %v3422_v6 = vpop.f32.mrb[41].mxu0  ;;  %v1845_v10 = vmul.f32 %v1760_v7, %v1581_v1  ;;  %v1790_v1 = vpop.permute.xlu0 %1789 }
 0x276   : > { %v3423_v8 = vadd.f32 %v3422_v6, %v3421_v3  ;;  %v3424_v9 = vpop.f32.mrb[42].mxu0 }
 0x277   : > { %v1846_v11 = vmul.f32 %v1765_v4, %v1584_v5  ;;  %v3425_v12 = vpop.f32.mrb[43].mxu0  ;;  %v3533_v13 = vpop.f32.mrb[40].mxu1 }
 0x278   : > { %v3426_v14 = vadd.f32 %v3425_v12, %v3424_v9  ;;  %v3534_v15 = vpop.f32.mrb[41].mxu1 }
 0x279   : > { %v3535_v16 = vadd.f32 %v3534_v15, %v3533_v13  ;;  %v3536_v17 = vpop.f32.mrb[42].mxu1  ;;  %v1868_v18 = vpack.c.bf16 %v1846_v11, %v1845_v10 }
 0x27a   : > { %v3537_v19 = vpop.f32.mrb[43].mxu1 }
 0x27b   : > { %v1589_v20 = vadd.f32 %v3535_v16, %v3423_v8  ;;  %v3538_v21 = vadd.f32 %v3537_v19, %v3536_v17  ;;  %2106 = vmatmul.mubr.bf16.gmra.mrb[100].mxu0 %v1868_v18  ;;  %v1805_v17 = vpop.permute.xlu1 %1804 }
 0x27c   : > { %v3427_v22 = vpop.f32.mrb[44].mxu0  ;;  %2115 = vmatprep.mubr.bf16.mxu0 %v4020_v0 }
 0x27d   : > { %v1592_v24 = vadd.f32 %v3538_v21, %v3426_v14  ;;  %v3428_v25 = vpop.f32.mrb[45].mxu0  ;;  %v1847_v29 = vmul.f32 %v1770_v26, %v1589_v20  ;;  %v1800_v20 = vpop.permute.xlu0 %1799 }
 0x27e   : > { %v3429_v27 = vadd.f32 %v3428_v25, %v3427_v22  ;;  %v3430_v28 = vpop.f32.mrb[46].mxu0 }
 0x27f   : > { %v1848_v30 = vmul.f32 %v1775_v23, %v1592_v24  ;;  %v3431_v31 = vpop.f32.mrb[47].mxu0  ;;  %v3539_v32 = vpop.f32.mrb[44].mxu1 }
 0x280   : > { %v3432_v33 = vadd.f32 %v3431_v31, %v3430_v28  ;;  %v3540_v34 = vpop.f32.mrb[45].mxu1 }
 0x281   : > { %v3541_v35 = vadd.f32 %v3540_v34, %v3539_v32  ;;  %v3542_v36 = vpop.f32.mrb[46].mxu1  ;;  %v1869_v37 = vpack.c.bf16 %v1848_v30, %v1847_v29 }
 0x282   : > { %v3543_v38 = vpop.f32.mrb[47].mxu1 }
 0x283   : > { %v1597_v39 = vadd.f32 %v3541_v35, %v3429_v27  ;;  %v3544_v40 = vadd.f32 %v3543_v38, %v3542_v36  ;;  %2116 = vmatmul.mubr.bf16.gmra.mrb[104].mxu0 %v1869_v37  ;;  %v1815_v36 = vpop.permute.xlu1 %1814 }
 0x284   : > { %v3433_v41 = vpop.f32.mrb[48].mxu0  ;;  %2125 = vmatprep.mubr.bf16.mxu0 %v4020_v0 }
 0x285   : > { %v1600_v43 = vadd.f32 %v3544_v40, %v3432_v33  ;;  %v3434_v44 = vpop.f32.mrb[49].mxu0  ;;  %v1849_v48 = vmul.f32 %v1780_v45, %v1597_v39  ;;  %v1810_v39 = vpop.permute.xlu0 %1809 }
 0x286   : > { %v3435_v46 = vadd.f32 %v3434_v44, %v3433_v41  ;;  %v3436_v47 = vpop.f32.mrb[50].mxu0 }
 0x287   : > { %v1850_v49 = vmul.f32 %v1785_v42, %v1600_v43  ;;  %v3437_v50 = vpop.f32.mrb[51].mxu0  ;;  %v3545_v51 = vpop.f32.mrb[48].mxu1 }
 0x288   : > { %v3438_v52 = vadd.f32 %v3437_v50, %v3436_v47  ;;  %v3546_v53 = vpop.f32.mrb[49].mxu1 }
 0x289   : > { %v3547_v54 = vadd.f32 %v3546_v53, %v3545_v51  ;;  %v3548_v55 = vpop.f32.mrb[50].mxu1  ;;  %v1870_v56 = vpack.c.bf16 %v1850_v49, %v1849_v48 }
 0x28a   : > { %v3549_v57 = vpop.f32.mrb[51].mxu1 }
 0x28b   : > { %v1605_v58 = vadd.f32 %v3547_v54, %v3435_v46  ;;  %v3550_v59 = vadd.f32 %v3549_v57, %v3548_v55  ;;  %2126 = vmatmul.mubr.bf16.gmra.mrb[108].mxu0 %v1870_v56  ;;  %v1825_v55 = vpop.permute.xlu1 %1824  ;;  %v1820_v56 = vpop.permute.xlu0 %1819 }
 0x28c   : > { %v3439_v60 = vpop.f32.mrb[52].mxu0  ;;  %2135 = vmatprep.mubr.bf16.mxu0 %v4020_v0 }
 0x28d   : > { %v1608_v62 = vadd.f32 %v3550_v59, %v3438_v52  ;;  %v3440_v63 = vpop.f32.mrb[53].mxu0  ;;  %v1851_v4 = vmul.f32 %v1790_v1, %v1605_v58 }
 0x28e   : > { %v3441_v2 = vadd.f32 %v3440_v63, %v3439_v60  ;;  %v3442_v3 = vpop.f32.mrb[54].mxu0  ;;  %v1893_v60 = vlaneseq  ;;  %v1891_v63 = vld [vmem:[%s4893_s6] sm:$0x3] }
 0x28f   : > { %v1852_v5 = vmul.f32 %v1795_v61, %v1608_v62  ;;  %v3443_v6 = vpop.f32.mrb[55].mxu0  ;;  %v3551_v7 = vpop.f32.mrb[52].mxu1 }
 0x290   : > { %v3444_v8 = vadd.f32 %v3443_v6, %v3442_v3  ;;  %v3552_v9 = vpop.f32.mrb[53].mxu1  ;;  %v1894_v61 = vshrl.u32 %v1893_v60, 7 }
 0x291   : > { %v3553_v10 = vadd.f32 %v3552_v9, %v3551_v7  ;;  %v3554_v11 = vpop.f32.mrb[54].mxu1  ;;  %v1871_v12 = vpack.c.bf16 %v1852_v5, %v1851_v4 }
 0x292   : > { %v3555_v13 = vpop.f32.mrb[55].mxu1  ;;  %v1895_v62 = vsub.s32 0, %v1894_v61  ;;  %v1899_v1 = vsub.s32 1, %v1894_v61 }
 0x293   : > { %v1613_v14 = vadd.f32 %v3553_v10, %v3441_v2  ;;  %v3556_v15 = vadd.f32 %v3555_v13, %v3554_v11  ;;  %2136 = vmatmul.mubr.bf16.gmra.mrb[112].mxu0 %v1871_v12 }
 0x294   : > { %v3445_v16 = vpop.f32.mrb[56].mxu0  ;;  %2145 = vmatprep.mubr.bf16.mxu0 %v4020_v0  ;;  %v4746_v2 = vrot.slane %v1891_v63, %v1895_v62  ;;  %v4748_v3 = vrot.slane %v1891_v63, %v1899_v1 }
 0x295   : > { %v1616_v18 = vadd.f32 %v3556_v15, %v3444_v8  ;;  %v3446_v19 = vpop.f32.mrb[57].mxu0  ;;  %v1853_v23 = vmul.f32 %v1800_v20, %v1613_v14 }
 0x296   : > { %v3447_v21 = vadd.f32 %v3446_v19, %v3445_v16  ;;  %v3448_v22 = vpop.f32.mrb[58].mxu0 }
 0x297   : > { %v1854_v24 = vmul.f32 %v1805_v17, %v1616_v18  ;;  %v3449_v25 = vpop.f32.mrb[59].mxu0  ;;  %v3557_v26 = vpop.f32.mrb[56].mxu1 }
 0x298   : > { %v3450_v27 = vadd.f32 %v3449_v25, %v3448_v22  ;;  %v3558_v28 = vpop.f32.mrb[57].mxu1 }
 0x299   : > { %v3559_v29 = vadd.f32 %v3558_v28, %v3557_v26  ;;  %v3560_v30 = vpop.f32.mrb[58].mxu1  ;;  %v1872_v31 = vpack.c.bf16 %v1854_v24, %v1853_v23 }
 0x29a   : > { %v3561_v32 = vpop.f32.mrb[59].mxu1 }
 0x29b   : > { %v1621_v33 = vadd.f32 %v3559_v29, %v3447_v21  ;;  %v3562_v34 = vadd.f32 %v3561_v32, %v3560_v30  ;;  %2146 = vmatmul.mubr.bf16.gmra.mrb[116].mxu0 %v1872_v31 }
 0x29c   : > { %v3451_v35 = vpop.f32.mrb[60].mxu0  ;;  %2155 = vmatprep.mubr.bf16.mxu0 %v4020_v0 }
 0x29d   : > { %v1624_v37 = vadd.f32 %v3562_v34, %v3450_v27  ;;  %v3452_v38 = vpop.f32.mrb[61].mxu0  ;;  %v1855_v42 = vmul.f32 %v1810_v39, %v1621_v33 }
 0x29e   : > { %v3453_v40 = vadd.f32 %v3452_v38, %v3451_v35  ;;  %v3454_v41 = vpop.f32.mrb[62].mxu0 }
 0x29f   : > { %v1856_v43 = vmul.f32 %v1815_v36, %v1624_v37  ;;  %v3455_v44 = vpop.f32.mrb[63].mxu0  ;;  %v3563_v45 = vpop.f32.mrb[60].mxu1 }
 0x2a0   : > { %v3456_v46 = vadd.f32 %v3455_v44, %v3454_v41  ;;  %v3564_v47 = vpop.f32.mrb[61].mxu1 }
 0x2a1   : > { %v3565_v48 = vadd.f32 %v3564_v47, %v3563_v45  ;;  %v3566_v49 = vpop.f32.mrb[62].mxu1  ;;  %v1873_v50 = vpack.c.bf16 %v1856_v43, %v1855_v42 }
 0x2a2   : > { %v3567_v51 = vpop.f32.mrb[63].mxu1 }
 0x2a3   : > { %v1629_v52 = vadd.f32 %v3565_v48, %v3453_v40  ;;  %v3568_v53 = vadd.f32 %v3567_v51, %v3566_v49  ;;  %2156 = vmatmul.mubr.bf16.gmra.mrb[120].mxu0 %v1873_v50 }
 0x2a4   : > { %2165 = vmatprep.mubr.bf16.mxu0 %v4020_v0 }
 0x2a5   : > { %v1632_v54 = vadd.f32 %v3568_v53, %v3456_v46  ;;  %v1857_v57 = vmul.f32 %v1820_v56, %v1629_v52 }
 0x2a7   : > { %v1858_v58 = vmul.f32 %v1825_v55, %v1632_v54 }
 0x2a9   : > { %v1874_v59 = vpack.c.bf16 %v1858_v58, %v1857_v57 }
 0x2ab   : > { %2166 = vmatmul.mubr.bf16.gmra.mrb[124].mxu0 %v1874_v59 }
 0x306   : > { %v2017_v0 = vpop.f32.mrb[64].mxu0 }
 0x307   : > { %v2018_v4 = vadd.f32 %v2017_v0, %v4746_v2  ;;  %v2019_v5 = vpop.f32.mrb[65].mxu0 }
 0x308   : > { %v2020_v6 = vadd.f32 %v2019_v5, %v4748_v3  ;;  %v2021_v7 = vpop.f32.mrb[66].mxu0 }
 0x309   : > { %v2022_v8 = vadd.f32 %v2021_v7, %v4746_v2  ;;  %v2023_v9 = vpop.f32.mrb[67].mxu0  ;;  %v2176_v11 = vmax.f32 %v2018_v4, 0.0 }
 0x30a   : > { %v2024_v10 = vadd.f32 %v2023_v9, %v4748_v3  ;;  %v2177_v13 = vmax.f32 %v2020_v6, 0.0 }
 0x30b   : > { %v2178_v12 = vmax.f32 %v2022_v8, 0.0 }
 0x30c   : > { %v2179_v14 = vmax.f32 %v2024_v10, 0.0 }
 0x30d   : > { %v2240_v15 = vpack.c.bf16 %v2178_v12, %v2176_v11 }
 0x30e   : > { %v2241_v16 = vpack.c.bf16 %v2179_v14, %v2177_v13  ;;  %v2027_v17 = vpop.f32.mrb[68].mxu0 }
 0x30f   : > { %v2028_v18 = vadd.f32 %v2027_v17, %v4746_v2  ;;  %v2029_v19 = vpop.f32.mrb[69].mxu0 }
 0x310   : > { %v2030_v20 = vadd.f32 %v2029_v19, %v4748_v3  ;;  %v2031_v21 = vpop.f32.mrb[70].mxu0  ;;  %2432 = vmatprep.mubr.bf16.mxu1 %v2241_v16 }
 0x311   : > { %v2032_v22 = vadd.f32 %v2031_v21, %v4746_v2  ;;  %v2033_v23 = vpop.f32.mrb[71].mxu0  ;;  %2433 = vmatmul.mubr.bf16.vlgmr.msra.gmra.mrb[64].mxu1 %v2240_v15  ;;  %v2180_v25 = vmax.f32 %v2028_v18, 0.0 }
 0x312   : > { %v2034_v24 = vadd.f32 %v2033_v23, %v4748_v3  ;;  %v2181_v27 = vmax.f32 %v2030_v20, 0.0 }
 0x313   : > { %v2182_v26 = vmax.f32 %v2032_v22, 0.0 }
 0x314   : > { %v2183_v28 = vmax.f32 %v2034_v24, 0.0 }
 0x315   : > { %v2242_v29 = vpack.c.bf16 %v2182_v26, %v2180_v25 }
 0x316   : > { %v2243_v30 = vpack.c.bf16 %v2183_v28, %v2181_v27  ;;  %v2037_v31 = vpop.f32.mrb[72].mxu0 }
 0x317   : > { %v2038_v32 = vadd.f32 %v2037_v31, %v4746_v2  ;;  %v2039_v33 = vpop.f32.mrb[73].mxu0 }
 0x318   : > { %v2040_v34 = vadd.f32 %v2039_v33, %v4748_v3  ;;  %v2041_v35 = vpop.f32.mrb[74].mxu0  ;;  %2440 = vmatprep.mubr.bf16.mxu1 %v2243_v30 }
 0x319   : > { %v2042_v36 = vadd.f32 %v2041_v35, %v4746_v2  ;;  %v2043_v37 = vpop.f32.mrb[75].mxu0  ;;  %2441 = vmatmul.mubr.bf16.gmra.mrb[68].mxu1 %v2242_v29  ;;  %v2184_v39 = vmax.f32 %v2038_v32, 0.0 }
 0x31a   : > { %v2044_v38 = vadd.f32 %v2043_v37, %v4748_v3  ;;  %v2185_v41 = vmax.f32 %v2040_v34, 0.0 }
 0x31b   : > { %v2186_v40 = vmax.f32 %v2042_v36, 0.0 }
 0x31c   : > { %v2187_v42 = vmax.f32 %v2044_v38, 0.0 }
 0x31d   : > { %v2244_v43 = vpack.c.bf16 %v2186_v40, %v2184_v39 }
 0x31e   : > { %v2245_v44 = vpack.c.bf16 %v2187_v42, %v2185_v41  ;;  %v2047_v45 = vpop.f32.mrb[76].mxu0 }
 0x31f   : > { %v2048_v46 = vadd.f32 %v2047_v45, %v4746_v2  ;;  %v2049_v47 = vpop.f32.mrb[77].mxu0 }
 0x320   : > { %v2050_v48 = vadd.f32 %v2049_v47, %v4748_v3  ;;  %v2051_v49 = vpop.f32.mrb[78].mxu0  ;;  %2448 = vmatprep.mubr.bf16.mxu1 %v2245_v44 }
 0x321   : > { %v2052_v50 = vadd.f32 %v2051_v49, %v4746_v2  ;;  %v2053_v51 = vpop.f32.mrb[79].mxu0  ;;  %2449 = vmatmul.mubr.bf16.gmra.mrb[72].mxu1 %v2244_v43  ;;  %v2188_v53 = vmax.f32 %v2048_v46, 0.0 }
 0x322   : > { %v2054_v52 = vadd.f32 %v2053_v51, %v4748_v3  ;;  %v2189_v55 = vmax.f32 %v2050_v48, 0.0 }
 0x323   : > { %v2190_v54 = vmax.f32 %v2052_v50, 0.0 }
 0x324   : > { %v2191_v56 = vmax.f32 %v2054_v52, 0.0 }
 0x325   : > { %v2246_v57 = vpack.c.bf16 %v2190_v54, %v2188_v53 }
 0x326   : > { %v2247_v58 = vpack.c.bf16 %v2191_v56, %v2189_v55  ;;  %v2057_v59 = vpop.f32.mrb[80].mxu0 }
 0x327   : > { %v2058_v60 = vadd.f32 %v2057_v59, %v4746_v2  ;;  %v2059_v61 = vpop.f32.mrb[81].mxu0 }
 0x328   : > { %v2060_v62 = vadd.f32 %v2059_v61, %v4748_v3  ;;  %v2061_v63 = vpop.f32.mrb[82].mxu0  ;;  %2456 = vmatprep.mubr.bf16.mxu1 %v2247_v58 }
 0x329   : > { %v2062_v1 = vadd.f32 %v2061_v63, %v4746_v2  ;;  %v2063_v0 = vpop.f32.mrb[83].mxu0  ;;  %2457 = vmatmul.mubr.bf16.gmra.mrb[76].mxu1 %v2246_v57  ;;  %v2192_v5 = vmax.f32 %v2058_v60, 0.0 }
 0x32a   : > { %v2064_v4 = vadd.f32 %v2063_v0, %v4748_v3  ;;  %v2193_v7 = vmax.f32 %v2060_v62, 0.0 }
 0x32b   : > { %v2194_v6 = vmax.f32 %v2062_v1, 0.0 }
 0x32c   : > { %v2195_v8 = vmax.f32 %v2064_v4, 0.0 }
 0x32d   : > { %v2248_v9 = vpack.c.bf16 %v2194_v6, %v2192_v5 }
 0x32e   : > { %v2249_v10 = vpack.c.bf16 %v2195_v8, %v2193_v7  ;;  %v2067_v11 = vpop.f32.mrb[84].mxu0 }
 0x32f   : > { %v2068_v12 = vadd.f32 %v2067_v11, %v4746_v2  ;;  %v2069_v13 = vpop.f32.mrb[85].mxu0 }
 0x330   : > { %v2070_v14 = vadd.f32 %v2069_v13, %v4748_v3  ;;  %v2071_v15 = vpop.f32.mrb[86].mxu0  ;;  %2464 = vmatprep.mubr.bf16.mxu1 %v2249_v10 }
 0x331   : > { %v2072_v16 = vadd.f32 %v2071_v15, %v4746_v2  ;;  %v2073_v17 = vpop.f32.mrb[87].mxu0  ;;  %2465 = vmatmul.mubr.bf16.gmra.mrb[80].mxu1 %v2248_v9  ;;  %v2196_v19 = vmax.f32 %v2068_v12, 0.0 }
 0x332   : > { %v2074_v18 = vadd.f32 %v2073_v17, %v4748_v3  ;;  %v2197_v21 = vmax.f32 %v2070_v14, 0.0 }
 0x333   : > { %v2198_v20 = vmax.f32 %v2072_v16, 0.0 }
 0x334   : > { %v2199_v22 = vmax.f32 %v2074_v18, 0.0 }
 0x335   : > { %v2250_v23 = vpack.c.bf16 %v2198_v20, %v2196_v19 }
 0x336   : > { %v2251_v24 = vpack.c.bf16 %v2199_v22, %v2197_v21  ;;  %v2077_v25 = vpop.f32.mrb[88].mxu0 }
 0x337   : > { %v2078_v26 = vadd.f32 %v2077_v25, %v4746_v2  ;;  %v2079_v27 = vpop.f32.mrb[89].mxu0 }
 0x338   : > { %v2080_v28 = vadd.f32 %v2079_v27, %v4748_v3  ;;  %v2081_v29 = vpop.f32.mrb[90].mxu0  ;;  %2472 = vmatprep.mubr.bf16.mxu1 %v2251_v24 }
 0x339   : > { %v2082_v30 = vadd.f32 %v2081_v29, %v4746_v2  ;;  %v2083_v31 = vpop.f32.mrb[91].mxu0  ;;  %2473 = vmatmul.mubr.bf16.gmra.mrb[84].mxu1 %v2250_v23  ;;  %v2200_v33 = vmax.f32 %v2078_v26, 0.0 }
 0x33a   : > { %v2084_v32 = vadd.f32 %v2083_v31, %v4748_v3  ;;  %v2201_v35 = vmax.f32 %v2080_v28, 0.0 }
 0x33b   : > { %v2202_v34 = vmax.f32 %v2082_v30, 0.0 }
 0x33c   : > { %v2203_v36 = vmax.f32 %v2084_v32, 0.0 }
 0x33d   : > { %v2252_v37 = vpack.c.bf16 %v2202_v34, %v2200_v33 }
 0x33e   : > { %v2253_v38 = vpack.c.bf16 %v2203_v36, %v2201_v35  ;;  %v2087_v39 = vpop.f32.mrb[92].mxu0 }
 0x33f   : > { %v2088_v40 = vadd.f32 %v2087_v39, %v4746_v2  ;;  %v2089_v41 = vpop.f32.mrb[93].mxu0 }
 0x340   : > { %v2090_v42 = vadd.f32 %v2089_v41, %v4748_v3  ;;  %v2091_v43 = vpop.f32.mrb[94].mxu0  ;;  %2480 = vmatprep.mubr.bf16.mxu1 %v2253_v38 }
 0x341   : > { %v2092_v44 = vadd.f32 %v2091_v43, %v4746_v2  ;;  %v2093_v45 = vpop.f32.mrb[95].mxu0  ;;  %2481 = vmatmul.mubr.bf16.gmra.mrb[88].mxu1 %v2252_v37  ;;  %v2204_v47 = vmax.f32 %v2088_v40, 0.0 }
 0x342   : > { %v2094_v46 = vadd.f32 %v2093_v45, %v4748_v3  ;;  %v2205_v49 = vmax.f32 %v2090_v42, 0.0 }
 0x343   : > { %v2206_v48 = vmax.f32 %v2092_v44, 0.0 }
 0x344   : > { %v2207_v50 = vmax.f32 %v2094_v46, 0.0 }
 0x345   : > { %v2254_v51 = vpack.c.bf16 %v2206_v48, %v2204_v47 }
 0x346   : > { %v2255_v52 = vpack.c.bf16 %v2207_v50, %v2205_v49  ;;  %v2097_v53 = vpop.f32.mrb[96].mxu0 }
 0x347   : > { %v2098_v54 = vadd.f32 %v2097_v53, %v4746_v2  ;;  %v2099_v55 = vpop.f32.mrb[97].mxu0 }
 0x348   : > { %v2100_v56 = vadd.f32 %v2099_v55, %v4748_v3  ;;  %v2101_v57 = vpop.f32.mrb[98].mxu0  ;;  %2488 = vmatprep.mubr.bf16.mxu1 %v2255_v52 }
 0x349   : > { %v2102_v58 = vadd.f32 %v2101_v57, %v4746_v2  ;;  %v2103_v59 = vpop.f32.mrb[99].mxu0  ;;  %2489 = vmatmul.mubr.bf16.gmra.mrb[92].mxu1 %v2254_v51  ;;  %v2208_v61 = vmax.f32 %v2098_v54, 0.0 }
 0x34a   : > { %v2104_v60 = vadd.f32 %v2103_v59, %v4748_v3  ;;  %v2209_v63 = vmax.f32 %v2100_v56, 0.0 }
 0x34b   : > { %v2210_v62 = vmax.f32 %v2102_v58, 0.0 }
 0x34c   : > { %v2211_v1 = vmax.f32 %v2104_v60, 0.0 }
 0x34d   : > { %v2256_v0 = vpack.c.bf16 %v2210_v62, %v2208_v61 }
 0x34e   : > { %v2257_v4 = vpack.c.bf16 %v2211_v1, %v2209_v63  ;;  %v2107_v5 = vpop.f32.mrb[100].mxu0 }
 0x34f   : > { %v2108_v6 = vadd.f32 %v2107_v5, %v4746_v2  ;;  %v2109_v7 = vpop.f32.mrb[101].mxu0 }
 0x350   : > { %v2110_v8 = vadd.f32 %v2109_v7, %v4748_v3  ;;  %v2111_v9 = vpop.f32.mrb[102].mxu0  ;;  %2496 = vmatprep.mubr.bf16.mxu1 %v2257_v4 }
 0x351   : > { %v2112_v10 = vadd.f32 %v2111_v9, %v4746_v2  ;;  %v2113_v11 = vpop.f32.mrb[103].mxu0  ;;  %2497 = vmatmul.mubr.bf16.gmra.mrb[96].mxu1 %v2256_v0  ;;  %v2212_v13 = vmax.f32 %v2108_v6, 0.0 }
 0x352   : > { %v2114_v12 = vadd.f32 %v2113_v11, %v4748_v3  ;;  %v2213_v15 = vmax.f32 %v2110_v8, 0.0 }
 0x353   : > { %v2214_v14 = vmax.f32 %v2112_v10, 0.0 }
 0x354   : > { %v2215_v16 = vmax.f32 %v2114_v12, 0.0 }
 0x355   : > { %v2258_v17 = vpack.c.bf16 %v2214_v14, %v2212_v13 }
 0x356   : > { %v2259_v18 = vpack.c.bf16 %v2215_v16, %v2213_v15  ;;  %v2117_v19 = vpop.f32.mrb[104].mxu0 }
 0x357   : > { %v2118_v20 = vadd.f32 %v2117_v19, %v4746_v2  ;;  %v2119_v21 = vpop.f32.mrb[105].mxu0 }
 0x358   : > { %v2120_v22 = vadd.f32 %v2119_v21, %v4748_v3  ;;  %v2121_v23 = vpop.f32.mrb[106].mxu0  ;;  %2504 = vmatprep.mubr.bf16.mxu1 %v2259_v18 }
 0x359   : > { %v2122_v24 = vadd.f32 %v2121_v23, %v4746_v2  ;;  %v2123_v25 = vpop.f32.mrb[107].mxu0  ;;  %2505 = vmatmul.mubr.bf16.gmra.mrb[100].mxu1 %v2258_v17  ;;  %v2216_v27 = vmax.f32 %v2118_v20, 0.0 }
 0x35a   : > { %v2124_v26 = vadd.f32 %v2123_v25, %v4748_v3  ;;  %v2217_v29 = vmax.f32 %v2120_v22, 0.0 }
 0x35b   : > { %v2218_v28 = vmax.f32 %v2122_v24, 0.0 }
 0x35c   : > { %v2219_v30 = vmax.f32 %v2124_v26, 0.0 }
 0x35d   : > { %v2260_v31 = vpack.c.bf16 %v2218_v28, %v2216_v27 }
 0x35e   : > { %v2261_v32 = vpack.c.bf16 %v2219_v30, %v2217_v29  ;;  %v2127_v33 = vpop.f32.mrb[108].mxu0 }
 0x35f   : > { %v2128_v34 = vadd.f32 %v2127_v33, %v4746_v2  ;;  %v2129_v35 = vpop.f32.mrb[109].mxu0 }
 0x360   : > { %v2130_v36 = vadd.f32 %v2129_v35, %v4748_v3  ;;  %v2131_v37 = vpop.f32.mrb[110].mxu0  ;;  %2512 = vmatprep.mubr.bf16.mxu1 %v2261_v32 }
 0x361   : > { %v2132_v38 = vadd.f32 %v2131_v37, %v4746_v2  ;;  %v2133_v39 = vpop.f32.mrb[111].mxu0  ;;  %2513 = vmatmul.mubr.bf16.gmra.mrb[104].mxu1 %v2260_v31  ;;  %v2220_v41 = vmax.f32 %v2128_v34, 0.0 }
 0x362   : > { %v2134_v40 = vadd.f32 %v2133_v39, %v4748_v3  ;;  %v2221_v43 = vmax.f32 %v2130_v36, 0.0 }
 0x363   : > { %v2222_v42 = vmax.f32 %v2132_v38, 0.0 }
 0x364   : > { %v2223_v44 = vmax.f32 %v2134_v40, 0.0 }
 0x365   : > { %v2262_v45 = vpack.c.bf16 %v2222_v42, %v2220_v41 }
 0x366   : > { %v2263_v46 = vpack.c.bf16 %v2223_v44, %v2221_v43  ;;  %v2137_v47 = vpop.f32.mrb[112].mxu0 }
 0x367   : > { %v2138_v48 = vadd.f32 %v2137_v47, %v4746_v2  ;;  %v2139_v49 = vpop.f32.mrb[113].mxu0  ;;  %v2596_v47 = vpop.permute.xlu0 %2595 }
 0x368   : > { %v2140_v50 = vadd.f32 %v2139_v49, %v4748_v3  ;;  %v2141_v51 = vpop.f32.mrb[114].mxu0  ;;  %2520 = vmatprep.mubr.bf16.mxu1 %v2263_v46  ;;  %v2601_v46 = vpop.permute.xlu1 %2600 }
 0x369   : > { %v2142_v52 = vadd.f32 %v2141_v51, %v4746_v2  ;;  %v2143_v53 = vpop.f32.mrb[115].mxu0  ;;  %2521 = vmatmul.mubr.bf16.gmra.mrb[108].mxu1 %v2262_v45  ;;  %v2224_v55 = vmax.f32 %v2138_v48, 0.0 }
 0x36a   : > { %v2144_v54 = vadd.f32 %v2143_v53, %v4748_v3  ;;  %v2225_v57 = vmax.f32 %v2140_v50, 0.0 }
 0x36b   : > { %v2226_v56 = vmax.f32 %v2142_v52, 0.0 }
 0x36c   : > { %v2227_v58 = vmax.f32 %v2144_v54, 0.0 }
 0x36d   : > { %v2264_v59 = vpack.c.bf16 %v2226_v56, %v2224_v55  ;;  %v2611_v56 = vpop.permute.xlu1 %2610 }
 0x36e   : > { %v2265_v60 = vpack.c.bf16 %v2227_v58, %v2225_v57  ;;  %v2147_v61 = vpop.f32.mrb[116].mxu0  ;;  %v2606_v57 = vpop.permute.xlu0 %2605 }
 0x36f   : > { %v2148_v62 = vadd.f32 %v2147_v61, %v4746_v2  ;;  %v2149_v63 = vpop.f32.mrb[117].mxu0 }
 0x370   : > { %v2150_v1 = vadd.f32 %v2149_v63, %v4748_v3  ;;  %v2151_v0 = vpop.f32.mrb[118].mxu0  ;;  %2528 = vmatprep.mubr.bf16.mxu1 %v2265_v60 }
 0x371   : > { %v2152_v4 = vadd.f32 %v2151_v0, %v4746_v2  ;;  %v2153_v5 = vpop.f32.mrb[119].mxu0  ;;  %2529 = vmatmul.mubr.bf16.gmra.mrb[112].mxu1 %v2264_v59  ;;  %v2228_v7 = vmax.f32 %v2148_v62, 0.0 }
 0x372   : > { %v2154_v6 = vadd.f32 %v2153_v5, %v4748_v3  ;;  %v2229_v9 = vmax.f32 %v2150_v1, 0.0  ;;  %v2621_v5 = vpop.permute.xlu1 %2620 }
 0x373   : > { %v2230_v8 = vmax.f32 %v2152_v4, 0.0 }
 0x374   : > { %v2231_v10 = vmax.f32 %v2154_v6, 0.0  ;;  %v2616_v6 = vpop.permute.xlu0 %2615 }
 0x375   : > { %v2266_v11 = vpack.c.bf16 %v2230_v8, %v2228_v7 }
 0x376   : > { %v2267_v12 = vpack.c.bf16 %v2231_v10, %v2229_v9  ;;  %v2157_v13 = vpop.f32.mrb[120].mxu0 }
 0x377   : > { %v2158_v14 = vadd.f32 %v2157_v13, %v4746_v2  ;;  %v2159_v15 = vpop.f32.mrb[121].mxu0 }
 0x378   : > { %v2160_v16 = vadd.f32 %v2159_v15, %v4748_v3  ;;  %v2161_v17 = vpop.f32.mrb[122].mxu0  ;;  %2536 = vmatprep.mubr.bf16.mxu1 %v2267_v12 }
 0x379   : > { %v2162_v18 = vadd.f32 %v2161_v17, %v4746_v2  ;;  %v2163_v19 = vpop.f32.mrb[123].mxu0  ;;  %2537 = vmatmul.mubr.bf16.gmra.mrb[116].mxu1 %v2266_v11  ;;  %v2232_v21 = vmax.f32 %v2158_v14, 0.0  ;;  %v2626_v17 = vpop.permute.xlu0 %2625 }
 0x37a   : > { %v2164_v20 = vadd.f32 %v2163_v19, %v4748_v3  ;;  %v2233_v23 = vmax.f32 %v2160_v16, 0.0  ;;  %v2631_v16 = vpop.permute.xlu1 %2630 }
 0x37b   : > { %v2234_v22 = vmax.f32 %v2162_v18, 0.0 }
 0x37c   : > { %v2235_v24 = vmax.f32 %v2164_v20, 0.0 }
 0x37d   : > { %v2268_v25 = vpack.c.bf16 %v2234_v22, %v2232_v21 }
 0x37e   : > { %v2269_v26 = vpack.c.bf16 %v2235_v24, %v2233_v23  ;;  %v2167_v27 = vpop.f32.mrb[124].mxu0 }
 0x37f   : > { %v2168_v28 = vadd.f32 %v2167_v27, %v4746_v2  ;;  %v2169_v29 = vpop.f32.mrb[125].mxu0  ;;  %v2641_v27 = vpop.permute.xlu1 %2640 }
 0x380   : > { %v2170_v30 = vadd.f32 %v2169_v29, %v4748_v3  ;;  %v2171_v31 = vpop.f32.mrb[126].mxu0  ;;  %2544 = vmatprep.mubr.bf16.mxu1 %v2269_v26 }
 0x381   : > { %v2172_v32 = vadd.f32 %v2171_v31, %v4746_v2  ;;  %v2173_v33 = vpop.f32.mrb[127].mxu0  ;;  %2545 = vmatmul.mubr.bf16.gmra.mrb[120].mxu1 %v2268_v25  ;;  %v2236_v35 = vmax.f32 %v2168_v28, 0.0  ;;  %v2636_v28 = vpop.permute.xlu0 %2635 }
 0x382   : > { %v2174_v34 = vadd.f32 %v2173_v33, %v4748_v3  ;;  %v2237_v37 = vmax.f32 %v2170_v30, 0.0 }
 0x383   : > { %v2238_v36 = vmax.f32 %v2172_v32, 0.0 }
 0x384   : > { %v2239_v38 = vmax.f32 %v2174_v34, 0.0 }
 0x385   : > { %v2270_v39 = vpack.c.bf16 %v2238_v36, %v2236_v35 }
 0x386   : > { %v2271_v40 = vpack.c.bf16 %v2239_v38, %v2237_v37  ;;  %v2651_v38 = vpop.permute.xlu1 %2650 }
 0x388   : > { %2552 = vmatprep.mubr.bf16.mxu1 %v2271_v40 }
 0x389   : > { %2553 = vmatmul.mubr.bf16.gmra.mrb[124].mxu1 %v2270_v39  ;;  %v2646_v39 = vpop.permute.xlu0 %2645 }
 0x3e4   : > { %v3585_v41 = vpop.f32.mrb[64].mxu1 }
 0x3e5   : > { %v3586_v42 = vpop.f32.mrb[65].mxu1 }
 0x3e6   : > { %v3587_v43 = vadd.f32 %v3586_v42, %v3585_v41  ;;  %v3588_v44 = vpop.f32.mrb[66].mxu1 }
 0x3e7   : > { %v3589_v45 = vpop.f32.mrb[67].mxu1 }
 0x3e8   : > { %v3590_v2 = vadd.f32 %v3589_v45, %v3588_v44  ;;  %v2753_v3 = vmul.f32 %v3587_v43, %v2596_v47 }
 0x3ea   : > { %v2754_v48 = vmul.f32 %v3590_v2, %v2601_v46 }
 0x3ec   : > { %v3253_v49 = vpack.c.bf16 %v2754_v48, %v2753_v3  ;;  %v3591_v50 = vpop.f32.mrb[68].mxu1  ;;  %v2661_v3 = vpop.permute.xlu1 %2660 }
 0x3ed   : > { %v3592_v51 = vpop.f32.mrb[69].mxu1  ;;  %v2656_v48 = vpop.permute.xlu0 %2655 }
 0x3ee   : > { %3254 = vst [vmem:[%s4817_s26] sm:$0xff] %v3253_v49   ;;  %v3593_v52 = vadd.f32 %v3592_v51, %v3591_v50  ;;  %v3594_v53 = vpop.f32.mrb[70].mxu1 }
 0x3ef   : > { %v3595_v54 = vpop.f32.mrb[71].mxu1 }
 0x3f0   : > { %v3596_v55 = vadd.f32 %v3595_v54, %v3594_v53  ;;  %v2755_v58 = vmul.f32 %v3593_v52, %v2606_v57 }
 0x3f2   : > { %v2756_v59 = vmul.f32 %v3596_v55, %v2611_v56 }
 0x3f4   : > { %v3258_v60 = vpack.c.bf16 %v2756_v59, %v2755_v58  ;;  %v3597_v61 = vpop.f32.mrb[72].mxu1  ;;  %v2671_v58 = vpop.permute.xlu1 %2670 }
 0x3f5   : > { %v3598_v62 = vpop.f32.mrb[73].mxu1  ;;  %v2666_v59 = vpop.permute.xlu0 %2665 }
 0x3f6   : > { %3330 = vst [vmem:[%s4817_s26 + $0x8] sm:$0xff] %v3258_v60   ;;  %v3599_v63 = vadd.f32 %v3598_v62, %v3597_v61  ;;  %v3600_v1 = vpop.f32.mrb[74].mxu1 }
 0x3f7   : > { %v3601_v0 = vpop.f32.mrb[75].mxu1 }
 0x3f8   : > { %v3602_v4 = vadd.f32 %v3601_v0, %v3600_v1  ;;  %v2757_v7 = vmul.f32 %v3599_v63, %v2616_v6 }
 0x3fa   : > { %v2758_v8 = vmul.f32 %v3602_v4, %v2621_v5 }
 0x3fc   : > { %v3263_v9 = vpack.c.bf16 %v2758_v8, %v2757_v7  ;;  %v3603_v10 = vpop.f32.mrb[76].mxu1  ;;  %v2681_v7 = vpop.permute.xlu1 %2680 }
 0x3fd   : > { %v3604_v11 = vpop.f32.mrb[77].mxu1  ;;  %v2676_v8 = vpop.permute.xlu0 %2675 }
 0x3fe   : > { %3331 = vst [vmem:[%s4817_s26 + $0x10] sm:$0xff] %v3263_v9   ;;  %v3605_v12 = vadd.f32 %v3604_v11, %v3603_v10  ;;  %v3606_v13 = vpop.f32.mrb[78].mxu1 }
 0x3ff   : > { %v3607_v14 = vpop.f32.mrb[79].mxu1 }
 0x400   : > { %v3608_v15 = vadd.f32 %v3607_v14, %v3606_v13  ;;  %v2759_v18 = vmul.f32 %v3605_v12, %v2626_v17 }
 0x402   : > { %v2760_v19 = vmul.f32 %v3608_v15, %v2631_v16 }
 0x404   : > { %v3268_v20 = vpack.c.bf16 %v2760_v19, %v2759_v18  ;;  %v3609_v21 = vpop.f32.mrb[80].mxu1  ;;  %v2691_v18 = vpop.permute.xlu1 %2690 }
 0x405   : > { %v3610_v22 = vpop.f32.mrb[81].mxu1  ;;  %v2686_v19 = vpop.permute.xlu0 %2685 }
 0x406   : > { %3332 = vst [vmem:[%s4817_s26 + $0x18] sm:$0xff] %v3268_v20   ;;  %v3611_v23 = vadd.f32 %v3610_v22, %v3609_v21  ;;  %v3612_v24 = vpop.f32.mrb[82].mxu1 }
 0x407   : > { %v3613_v25 = vpop.f32.mrb[83].mxu1 }
 0x408   : > { %v3614_v26 = vadd.f32 %v3613_v25, %v3612_v24  ;;  %v2761_v29 = vmul.f32 %v3611_v23, %v2636_v28 }
 0x40a   : > { %v2762_v30 = vmul.f32 %v3614_v26, %v2641_v27 }
 0x40c   : > { %v3273_v31 = vpack.c.bf16 %v2762_v30, %v2761_v29  ;;  %v3615_v32 = vpop.f32.mrb[84].mxu1  ;;  %v2701_v29 = vpop.permute.xlu1 %2700 }
 0x40d   : > { %v3616_v33 = vpop.f32.mrb[85].mxu1  ;;  %v2696_v30 = vpop.permute.xlu0 %2695 }
 0x40e   : > { %3333 = vst [vmem:[%s4817_s26 + $0x20] sm:$0xff] %v3273_v31   ;;  %v3617_v34 = vadd.f32 %v3616_v33, %v3615_v32  ;;  %v3618_v35 = vpop.f32.mrb[86].mxu1 }
 0x40f   : > { %v3619_v36 = vpop.f32.mrb[87].mxu1 }
 0x410   : > { %v3620_v37 = vadd.f32 %v3619_v36, %v3618_v35  ;;  %v2763_v40 = vmul.f32 %v3617_v34, %v2646_v39 }
 0x412   : > { %v2764_v41 = vmul.f32 %v3620_v37, %v2651_v38 }
 0x414   : > { %v3278_v42 = vpack.c.bf16 %v2764_v41, %v2763_v40  ;;  %v3621_v43 = vpop.f32.mrb[88].mxu1  ;;  %v2711_v40 = vpop.permute.xlu1 %2710 }
 0x415   : > { %v3622_v44 = vpop.f32.mrb[89].mxu1  ;;  %v2706_v41 = vpop.permute.xlu0 %2705 }
 0x416   : > { %3334 = vst [vmem:[%s4817_s26 + $0x28] sm:$0xff] %v3278_v42   ;;  %v3623_v45 = vadd.f32 %v3622_v44, %v3621_v43  ;;  %v3624_v2 = vpop.f32.mrb[90].mxu1 }
 0x417   : > { %v3625_v46 = vpop.f32.mrb[91].mxu1 }
 0x418   : > { %v3626_v47 = vadd.f32 %v3625_v46, %v3624_v2  ;;  %v2765_v49 = vmul.f32 %v3623_v45, %v2656_v48 }
 0x41a   : > { %v2766_v50 = vmul.f32 %v3626_v47, %v2661_v3 }
 0x41c   : > { %v3283_v51 = vpack.c.bf16 %v2766_v50, %v2765_v49  ;;  %v3627_v52 = vpop.f32.mrb[92].mxu1  ;;  %v2721_v49 = vpop.permute.xlu1 %2720 }
 0x41d   : > { %v3628_v53 = vpop.f32.mrb[93].mxu1  ;;  %v2716_v50 = vpop.permute.xlu0 %2715 }
 0x41e   : > { %3335 = vst [vmem:[%s4817_s26 + $0x30] sm:$0xff] %v3283_v51   ;;  %v3629_v54 = vadd.f32 %v3628_v53, %v3627_v52  ;;  %v3630_v55 = vpop.f32.mrb[94].mxu1 }
 0x41f   : > { %v3631_v56 = vpop.f32.mrb[95].mxu1 }
 0x420   : > { %v3632_v57 = vadd.f32 %v3631_v56, %v3630_v55  ;;  %v2767_v60 = vmul.f32 %v3629_v54, %v2666_v59 }
 0x422   : > { %v2768_v61 = vmul.f32 %v3632_v57, %v2671_v58 }
 0x424   : > { %v3288_v62 = vpack.c.bf16 %v2768_v61, %v2767_v60  ;;  %v3633_v63 = vpop.f32.mrb[96].mxu1  ;;  %v2731_v60 = vpop.permute.xlu1 %2730 }
 0x425   : > { %v3634_v1 = vpop.f32.mrb[97].mxu1  ;;  %v2726_v61 = vpop.permute.xlu0 %2725 }
 0x426   : > { %3336 = vst [vmem:[%s4817_s26 + $0x38] sm:$0xff] %v3288_v62   ;;  %v3635_v0 = vadd.f32 %v3634_v1, %v3633_v63  ;;  %v3636_v4 = vpop.f32.mrb[98].mxu1 }
 0x427   : > { %v3637_v5 = vpop.f32.mrb[99].mxu1 }
 0x428   : > { %v3638_v6 = vadd.f32 %v3637_v5, %v3636_v4  ;;  %v2769_v9 = vmul.f32 %v3635_v0, %v2676_v8 }
 0x42a   : > { %v2770_v10 = vmul.f32 %v3638_v6, %v2681_v7 }
 0x42c   : > { %v3293_v11 = vpack.c.bf16 %v2770_v10, %v2769_v9  ;;  %v3639_v12 = vpop.f32.mrb[100].mxu1  ;;  %v2741_v9 = vpop.permute.xlu1 %2740 }
 0x42d   : > { %v3640_v13 = vpop.f32.mrb[101].mxu1  ;;  %v2736_v10 = vpop.permute.xlu0 %2735 }
 0x42e   : > { %3337 = vst [vmem:[%s4817_s26 + $0x40] sm:$0xff] %v3293_v11   ;;  %v3641_v14 = vadd.f32 %v3640_v13, %v3639_v12  ;;  %v3642_v15 = vpop.f32.mrb[102].mxu1 }
 0x42f   : > { %v3643_v16 = vpop.f32.mrb[103].mxu1 }
 0x430   : > { %v3644_v17 = vadd.f32 %v3643_v16, %v3642_v15  ;;  %v2771_v20 = vmul.f32 %v3641_v14, %v2686_v19 }
 0x432   : > { %v2772_v21 = vmul.f32 %v3644_v17, %v2691_v18 }
 0x434   : > { %v3298_v22 = vpack.c.bf16 %v2772_v21, %v2771_v20  ;;  %v3645_v23 = vpop.f32.mrb[104].mxu1  ;;  %v2751_v20 = vpop.permute.xlu1 %2750 }
 0x435   : > { %v3646_v24 = vpop.f32.mrb[105].mxu1  ;;  %v2746_v21 = vpop.permute.xlu0 %2745 }
 0x436   : > { %3338 = vst [vmem:[%s4817_s26 + $0x48] sm:$0xff] %v3298_v22   ;;  %v3647_v25 = vadd.f32 %v3646_v24, %v3645_v23  ;;  %v3648_v26 = vpop.f32.mrb[106].mxu1 }
 0x437   : > { %v3649_v27 = vpop.f32.mrb[107].mxu1 }
 0x438   : > { %v3650_v28 = vadd.f32 %v3649_v27, %v3648_v26  ;;  %v2773_v31 = vmul.f32 %v3647_v25, %v2696_v30 }
 0x43a   : > { %v2774_v32 = vmul.f32 %v3650_v28, %v2701_v29 }
 0x43c   : > { %v3303_v33 = vpack.c.bf16 %v2774_v32, %v2773_v31  ;;  %v3651_v34 = vpop.f32.mrb[108].mxu1 }
 0x43d   : > { %v3652_v35 = vpop.f32.mrb[109].mxu1 }
 0x43e   : > { %3339 = vst [vmem:[%s4817_s26 + $0x50] sm:$0xff] %v3303_v33   ;;  %v3653_v36 = vadd.f32 %v3652_v35, %v3651_v34  ;;  %v3654_v37 = vpop.f32.mrb[110].mxu1 }
 0x43f   : > { %v3655_v38 = vpop.f32.mrb[111].mxu1 }
 0x440   : > { %v3656_v39 = vadd.f32 %v3655_v38, %v3654_v37  ;;  %v2775_v42 = vmul.f32 %v3653_v36, %v2706_v41 }
 0x442   : > { %v2776_v43 = vmul.f32 %v3656_v39, %v2711_v40 }
 0x444   : > { %v3308_v44 = vpack.c.bf16 %v2776_v43, %v2775_v42  ;;  %v3657_v45 = vpop.f32.mrb[112].mxu1 }
 0x445   : > { %v3658_v2 = vpop.f32.mrb[113].mxu1 }
 0x446   : > { %3340 = vst [vmem:[%s4817_s26 + $0x58] sm:$0xff] %v3308_v44   ;;  %v3659_v46 = vadd.f32 %v3658_v2, %v3657_v45  ;;  %v3660_v47 = vpop.f32.mrb[114].mxu1 }
 0x447   : > { %v3661_v3 = vpop.f32.mrb[115].mxu1 }
 0x448   : > { %v3662_v48 = vadd.f32 %v3661_v3, %v3660_v47  ;;  %v2777_v51 = vmul.f32 %v3659_v46, %v2716_v50 }
 0x44a   : > { %v2778_v52 = vmul.f32 %v3662_v48, %v2721_v49 }
 0x44c   : > { %v3313_v53 = vpack.c.bf16 %v2778_v52, %v2777_v51  ;;  %v3663_v54 = vpop.f32.mrb[116].mxu1 }
 0x44d   : > { %v3664_v55 = vpop.f32.mrb[117].mxu1 }
 0x44e   : > { %3341 = vst [vmem:[%s4817_s26 + $0x60] sm:$0xff] %v3313_v53   ;;  %v3665_v56 = vadd.f32 %v3664_v55, %v3663_v54  ;;  %v3666_v57 = vpop.f32.mrb[118].mxu1 }
 0x44f   : > { %v3667_v58 = vpop.f32.mrb[119].mxu1 }
 0x450   : > { %v3668_v59 = vadd.f32 %v3667_v58, %v3666_v57  ;;  %v2779_v62 = vmul.f32 %v3665_v56, %v2726_v61 }
 0x452   : > { %v2780_v63 = vmul.f32 %v3668_v59, %v2731_v60 }
 0x454   : > { %v3318_v1 = vpack.c.bf16 %v2780_v63, %v2779_v62  ;;  %v3669_v0 = vpop.f32.mrb[120].mxu1 }
 0x455   : > { %v3670_v4 = vpop.f32.mrb[121].mxu1 }
 0x456   : > { %3342 = vst [vmem:[%s4817_s26 + $0x68] sm:$0xff] %v3318_v1   ;;  %v3671_v5 = vadd.f32 %v3670_v4, %v3669_v0  ;;  %v3672_v6 = vpop.f32.mrb[122].mxu1 }
 0x457   : > { %v3673_v7 = vpop.f32.mrb[123].mxu1 }
 0x458   : > { %v3674_v8 = vadd.f32 %v3673_v7, %v3672_v6  ;;  %v2781_v11 = vmul.f32 %v3671_v5, %v2736_v10 }
 0x45a   : > { %v2782_v12 = vmul.f32 %v3674_v8, %v2741_v9 }
 0x45c   : > { %v3323_v13 = vpack.c.bf16 %v2782_v12, %v2781_v11  ;;  %v3675_v14 = vpop.f32.mrb[124].mxu1 }
 0x45d   : > { %v3676_v15 = vpop.f32.mrb[125].mxu1 }
 0x45e   : > { %3343 = vst [vmem:[%s4817_s26 + $0x70] sm:$0xff] %v3323_v13   ;;  %v3677_v16 = vadd.f32 %v3676_v15, %v3675_v14  ;;  %v3678_v17 = vpop.f32.mrb[126].mxu1 }
 0x45f   : > { %v3679_v18 = vpop.f32.mrb[127].mxu1 }
 0x460   : > { %v3680_v19 = vadd.f32 %v3679_v18, %v3678_v17  ;;  %v2783_v22 = vmul.f32 %v3677_v16, %v2746_v21 }
 0x462   : > { %v2784_v23 = vmul.f32 %v3680_v19, %v2751_v20 }
 0x464   : > { %v3328_v24 = vpack.c.bf16 %v2784_v23, %v2783_v22 }
 0x466   : > { %3344 = vst [vmem:[%s4817_s26 + $0x78] sm:$0xff] %v3328_v24  }
 0x467   : > { %3955 = shalt.err (!%p3952_p11)
}
 0x468   : > { %s3956_s23 = scalar_lea.hbm %s4839_s10, 2048  ;;  %s3960_s20 = scalar_lea.hbm %s4895_s8, 4096 }
 0x469   : > { %p3957_p13 = scmp.ne.s32.totalorder %s4839_s10, %s3956_s23  ;;  %p3961_p6 = scmp.lt.u32.totalorder %s4839_s10, %s4895_s8 }
 0x46a   : > { %p3962_p9 = scmp.lt.u32.totalorder %s3960_s20, %s3956_s23  ;;  %p3964_p10 = scmp.lt.u32.totalorder %s3956_s23, %s4839_s10 }
 0x46b   : > { %p3958_p0 = pnand %p3957_p13, %p4911_p1 }
 0x46c   : > { %p3963_p12 = por %p3962_p9, %p3961_p6 }
 0x46d   : > { %p3959_p5 = pneg %p3958_p0 }
 0x46e   : > { %p3965_p2 = por %p3964_p10, %p3963_p12 }
 0x470   : > { %p3966_p3 = pnand %p3965_p2, %p3959_p5 }
 0x472   : > { %3969 = shalt.err (!%p3966_p3)
}
 0x473   : > { %s4022_s18 = smov 64   ;;  %s4023_s12 = smov 4  }
 0x474   : > { %3689 = dma.vmem_to_hbm [thread:$0]  (%p4911_p1), %s4841_s17, 2048, %s4839_s10, %s4846_s13, %s4022_s18, %s4022_s18, %s4023_s12  }
 0x475 PF: > { %p3706_p4 = scmp.ge.s32.totalorder %s4012_s30, 2  ;;  %s2974_s24 = sand.u32 1, %s4000_s27  }
 0x476   : > { %p4912_p7 = scmp.ne.s32.totalorder %s4903_s16, 0  ;;  %s2975_s9 = scalar_lea.sflag [#allocation4], %s2974_s24 }
 0x478   : > { %p3699_p8 = pnand %p3706_p4, %p4912_p7 }
 0x47a   : > { %3995 = dma.done.wait (!%p3699_p8), %s2975_s9, 2048  }
 0x47b   : > { %3997 = vsyncadd (!%p3699_p8), %s2975_s9, 4294965248  ;;  %s4913_s19 = sld [smem:[#allocation11_spill]]  ;;  %s4914_s29 = sld [smem:[#allocation12_spill]] }
 0x47c   : > { %p20_p11 = scmp.ge.s32.totalorder %s4094_s11, 4   ;;  %s4915_s27 = smov %s4004_s28 }
 0x47d   : > { %s4917_s30 = smov %s4094_s11 }
 0x47e   :  { %22 = sbr.rel (!%p20_p11) target bundleno = 5 (0x5), region = 102 }
 0x481   : > { %s4916_s28 = smov %s4913_s19 }
 0x485   :  { %2980 = vsyncpa [#allocation3], 1 }
 0x486   :  { %2982 = vsyncpa [#allocation3 + $0x1], 1 }
 0x487   :  { %2983 = vsyncpa [#allocation6], 1 }
 0x488   :  { %2984 = vsyncpa [#allocation4], 1 }
 0x489   :  { %2986 = vsyncpa [#allocation4 + $0x1], 1 }

</bundles_post_ra>
